<compile_context>
chip_gen: v7x
topology: tpu7x:2x2x1
jax: 0.10.0
libtpu: 0.0.40
codegen_flags: <defaults>
</compile_context>

<pallas_src>
import functools

import jax
import jax.numpy as jnp
from jax.experimental import pallas as pl
from jax.experimental.pallas import tpu as pltpu

BN_EPS = 1e-5

C0 = 256                   # input channels
C1 = 256                   # conv1 out
C2 = 128                   # conv2 out
C3 = 128                   # conv3 out
FC_PAD = 128               # fc output (2) padded to a full lane tile
BCOL_ROWS = C1 + C2 + C3   # 512 packed per-channel conv biases (column form)


def _round_up(a, b):
    return (a + b - 1) // b * b


def _vmem_capacity_bytes():
    # Real per-core VMEM (64 MiB on v7x, 128 MiB on v5e/v6e); conservative
    # fallback keeps the kernel portable if the query is unavailable.
    try:
        return int(pltpu.get_tpu_info().vmem_capacity_bytes)
    except Exception:
        return 64 << 20


def _netd_1_b_kernel(x_ref, w1_ref, w2_ref, w3_ref, wfc_ref, bcol_ref,
                     bfc_ref, o_ref, acc_ref, *, hw, tile_hw, n_chunks):
    k = pl.program_id(1)
    n_k = pl.num_programs(1)

    @pl.when(k == 0)
    def _init():
        acc_ref[...] = jnp.zeros_like(acc_ref)

    # Packed per-channel biases (folded BN), column form -> lane broadcast.
    b1 = bcol_ref[0:C1, :]                          # (C1, 1) f32
    b2 = bcol_ref[C1:C1 + C2, :]                    # (C2, 1) f32
    b3 = bcol_ref[C1 + C2:BCOL_ROWS, :]             # (C3, 1) f32

    chunk = tile_hw // n_chunks

    # Independent pixel sub-chunks per tile: the serially dependent conv1->2->3
    # chains of different chunks interleave, keeping the MXU fed while the VPU
    # does bias+ReLU+cast and the XLU does the pooled reduce.
    hs = []
    for i in range(n_chunks):
        x = x_ref[0, :, i * chunk:(i + 1) * chunk]  # (C0, chunk) bf16
        h = jnp.dot(w1_ref[...], x, preferred_element_type=jnp.float32) + b1
        h = jnp.maximum(h, 0.0).astype(jnp.bfloat16)
        h = jnp.dot(w2_ref[...], h, preferred_element_type=jnp.float32) + b2
        h = jnp.maximum(h, 0.0).astype(jnp.bfloat16)
        h = jnp.dot(w3_ref[...], h, preferred_element_type=jnp.float32) + b3
        hs.append(jnp.maximum(h, 0.0))              # (C3, chunk) f32

    def _accumulate(masked):
        total = jnp.zeros((C3, 1), jnp.float32)
        for i, h in enumerate(hs):
            if masked:
                # Zero the over-read pixel columns of the ragged last tile.
                col = (k * tile_hw + i * chunk
                       + jax.lax.broadcasted_iota(jnp.int32, h.shape, 1))
                h = jnp.where(col < hw, h, 0.0)
            total = total + jnp.sum(h, axis=1, keepdims=True)
        acc_ref[...] += total

    if hw % tile_hw != 0:
        # Over-read only ever lives in the last pixel tile; all other tiles
        # stay on the mask-free path (static decision, dynamic tile check).
        @pl.when(k < n_k - 1)
        def _full_tiles():
            _accumulate(masked=False)

        @pl.when(k == n_k - 1)
        def _ragged_tile():
            _accumulate(masked=True)
    else:
        _accumulate(masked=False)

    @pl.when(k == n_k - 1)
    def _finalize():
        pooled = acc_ref[...] * (1.0 / hw)          # global avg-pool, (C3, 1)
        # fc as VPU multiply + sublane reduce -> lane-dense (1, FC_PAD) row.
        logits = (jnp.sum(wfc_ref[...] * pooled, axis=0, keepdims=True)
                  + bfc_ref[...])
        o_ref[0] = logits


def netd_1_b_forward(x_nchw, params, *, tile_hw=2048):
    """x_nchw: (N, 256, H, W); params: output of fold_params()."""
    n, c, h, w = x_nchw.shape
    assert c == C0, f"expected {C0} input channels, got {c}"
    hw = h * w

    # Free reshape (no transpose, no pad): channels on sublanes, pixels on
    # lanes. bf16 halves the dominant x-side HBM traffic.
    x = x_nchw.reshape(n, c, hw).astype(jnp.bfloat16)

    # Pixel tile: multiple of 256 so the two sub-chunks stay 128-lane aligned;
    # the last block may over-read past hw (masked in-kernel).
    tile_hw = min(_round_up(tile_hw, 256), _round_up(hw, 256))
    n_chunks = 2
    n_k = (hw + tile_hw - 1) // tile_hw
    grid = (n, n_k)

    kernel = functools.partial(_netd_1_b_kernel, hw=hw, tile_hw=tile_hw,
                               n_chunks=n_chunks)

    # VMEM budget: double-buffered bf16 x tile + resident weights/biases +
    # per-chunk activations + headroom, clamped to physical per-core VMEM.
    x_bytes = 2 * C0 * tile_hw * 2
    w_bytes = 2 * ((C1 * C0 + C2 * C1 + C3 * C2) * 2
                   + (C3 * FC_PAD + BCOL_ROWS + FC_PAD) * 4)
    act_bytes = 3 * C1 * tile_hw * 4
    vmem_limit = int(min(_vmem_capacity_bytes(),
                         x_bytes + w_bytes + act_bytes + (8 << 20)))

    out_pad = pl.pallas_call(
        kernel,
        out_shape=jax.ShapeDtypeStruct((n, 1, FC_PAD), jnp.float32),
        grid_spec=pltpu.PrefetchScalarGridSpec(
            num_scalar_prefetch=0,
            grid=grid,
            in_specs=[
                pl.BlockSpec((1, C0, tile_hw), lambda b, k: (b, 0, k)),
                pl.BlockSpec((C1, C0), lambda b, k: (0, 0)),
                pl.BlockSpec((C2, C1), lambda b, k: (0, 0)),
                pl.BlockSpec((C3, C2), lambda b, k: (0, 0)),
                pl.BlockSpec((C3, FC_PAD), lambda b, k: (0, 0)),
                pl.BlockSpec((BCOL_ROWS, 1), lambda b, k: (0, 0)),
                pl.BlockSpec((1, FC_PAD), lambda b, k: (0, 0)),
            ],
            out_specs=pl.BlockSpec((1, 1, FC_PAD), lambda b, k: (b, 0, 0)),
            scratch_shapes=[pltpu.VMEM((C3, 1), jnp.float32)],
        ),
        compiler_params=pltpu.CompilerParams(
            dimension_semantics=("parallel", "arbitrary"),
            vmem_limit_bytes=vmem_limit,
        ),
    )(x, params["w1"], params["w2"], params["w3"], params["wfc"],
      params["bcol"], params["bfc"])

    # TODO(synk): for N==1 on v7x, split the pixel axis across the two
    # TensorCores (per-core pooled partials finished in the wrapper); with a
    # batch-only parallel axis one core idles.
    return out_pad[:, 0, :2]


def make_raw_params(key):
    """Deterministic synthetic parameters in PyTorch layout.
    Conv weights are (C_out, C_in) (trivial 1x1 spatial dims dropped)."""
    ks = jax.random.split(key, 8)

    def conv_w(k, c_out, c_in):
        bound = 1.0 / (c_in ** 0.5)
        return jax.random.uniform(k, (c_out, c_in), jnp.float32, -bound, bound)

    def bn(k, c):
        kg, kb, km, kv = jax.random.split(k, 4)
        g = 1.0 + 0.1 * jax.random.normal(kg, (c,), jnp.float32)
        be = 0.1 * jax.random.normal(kb, (c,), jnp.float32)
        m = 0.1 * jax.random.normal(km, (c,), jnp.float32)
        v = 1.0 + 0.1 * jax.random.uniform(kv, (c,), jnp.float32)
        return g, be, m, v

    w1 = conv_w(ks[0], C1, C0)
    w2 = conv_w(ks[1], C2, C1)
    w3 = conv_w(ks[2], C3, C2)
    g1, be1, m1, v1 = bn(ks[3], C1)
    g2, be2, m2, v2 = bn(ks[4], C2)
    g3, be3, m3, v3 = bn(ks[5], C3)

    bound_fc = 1.0 / (C3 ** 0.5)
    wfc = jax.random.uniform(ks[6], (2, C3), jnp.float32, -bound_fc, bound_fc)
    bfc = jax.random.uniform(ks[7], (2,), jnp.float32, -bound_fc, bound_fc)

    return dict(w1=w1, w2=w2, w3=w3,
                g1=g1, be1=be1, m1=m1, v1=v1,
                g2=g2, be2=be2, m2=m2, v2=v2,
                g3=g3, be3=be3, m3=m3, v3=v3,
                wfc=wfc, bfc=bfc)


def fold_params(raw):
    """Fold eval-mode BN into the 1x1 convs. Conv weights stay (C_out, C_in)
    (matches h = W @ x with pixels on lanes) and are cast to bf16; conv biases
    are packed into one f32 column buffer; fc is padded to 128 output lanes."""
    def fold_conv_bn(w_oc_ic, g, be, m, v):
        scale = g * jax.lax.rsqrt(v + BN_EPS)                 # (C_out,)
        w = (w_oc_ic * scale[:, None]).astype(jnp.bfloat16)   # (C_out, C_in)
        b = (be - m * scale).astype(jnp.float32)              # (C_out,)
        return w, b

    w1, b1 = fold_conv_bn(raw["w1"], raw["g1"], raw["be1"], raw["m1"], raw["v1"])
    w2, b2 = fold_conv_bn(raw["w2"], raw["g2"], raw["be2"], raw["m2"], raw["v2"])
    w3, b3 = fold_conv_bn(raw["w3"], raw["g3"], raw["be3"], raw["m3"], raw["v3"])

    # fc kept f32 (runs once per image): (C_in, C_out) padded to 128 lanes.
    wfc = jnp.zeros((C3, FC_PAD), jnp.float32).at[:, :2].set(raw["wfc"].T)
    bfc = jnp.zeros((1, FC_PAD), jnp.float32).at[0, :2].set(raw["bfc"])

    bcol = jnp.concatenate([b1, b2, b3]).reshape(BCOL_ROWS, 1)
    return dict(w1=w1, w2=w2, w3=w3, wfc=wfc, bfc=bfc, bcol=bcol)


def netd_1_b_reference(x_nchw, raw):
    """Pure-JAX eval-mode reference matching the PyTorch module (unfolded BN)."""
    def conv_bn_relu(x, w, g, be, m, v):
        y = jnp.einsum("nchw,oc->nohw", x, w)
        scale = (g * jax.lax.rsqrt(v + BN_EPS))[None, :, None, None]
        y = (y - m[None, :, None, None]) * scale + be[None, :, None, None]
        return jnp.maximum(y, 0.0)

    h = conv_bn_relu(x_nchw, raw["w1"], raw["g1"], raw["be1"], raw["m1"], raw["v1"])
    h = conv_bn_relu(h, raw["w2"], raw["g2"], raw["be2"], raw["m2"], raw["v2"])
    h = conv_bn_relu(h, raw["w3"], raw["g3"], raw["be3"], raw["m3"], raw["v3"])
    pooled = jnp.mean(h, axis=(2, 3))                         # (N, 128)
    return pooled @ raw["wfc"].T + raw["bfc"]


if __name__ == "__main__":
    key = jax.random.PRNGKey(0)
    k_x, k_p, k_x2 = jax.random.split(key, 3)

    raw = make_raw_params(k_p)
    params = fold_params(raw)

    # Case 1: HW a multiple of the pixel tile (mask-free path).
    N, H, W = 2, 16, 16                  # channels fixed at 256 by the module
    x = jax.random.normal(k_x, (N, C0, H, W), jnp.float32)
    out = jax.block_until_ready(netd_1_b_forward(x, params))
    ref = netd_1_b_reference(x, raw)
    assert out.shape == (N, 2), f"bad output shape {out.shape}"
    assert jnp.allclose(out, ref, atol=3e-2, rtol=3e-2), (
        f"mismatch vs JAX reference (max abs diff {jnp.max(jnp.abs(out - ref))})")

    # Case 2: ragged HW exercising the over-read + last-tile mask path.
    H2, W2 = 15, 13
    x2 = jax.random.normal(k_x2, (N, C0, H2, W2), jnp.float32)
    out2 = jax.block_until_ready(netd_1_b_forward(x2, params))
    ref2 = netd_1_b_reference(x2, raw)
    assert jnp.allclose(out2, ref2, atol=3e-2, rtol=3e-2), (
        f"ragged mismatch vs reference (max abs diff {jnp.max(jnp.abs(out2 - ref2))})")

    print("KERNEL_OK")
</pallas_src>

<mosaic_0001>
module attributes {stable_mosaic.version = 11 : i64} {
  func.func @_netd_1_b_kernel(%arg0: i32, %arg1: i32, %arg2: memref<1x256x256xbf16, #tpu.memory_space<vmem>>, %arg3: memref<256x256xbf16, #tpu.memory_space<vmem>>, %arg4: memref<128x256xbf16, #tpu.memory_space<vmem>>, %arg5: memref<128x128xbf16, #tpu.memory_space<vmem>>, %arg6: memref<128x128xf32, #tpu.memory_space<vmem>>, %arg7: memref<512x1xf32, #tpu.memory_space<vmem>>, %arg8: memref<1x128xf32, #tpu.memory_space<vmem>>, %arg9: memref<1x1x128xf32, #tpu.memory_space<vmem>>, %arg10: memref<128x1xf32, #tpu.memory_space<vmem>>) attributes {dimension_semantics = [#tpu.dimension_semantics<parallel>, #tpu.dimension_semantics<arbitrary>], iteration_bounds = array<i64: 2, 1>, scalar_prefetch = 0 : i64, scratch_operands = 1 : i64, tpu.core_type = #tpu.core_type<tc>, window_params = [{transform_indices = @transform_0, window_bounds = array<i64: 1, 256, 256>}, {pipeline_mode = #tpu.pipeline_mode<synchronous>, transform_indices = @transform_1, window_bounds = array<i64: 256, 256>}, {pipeline_mode = #tpu.pipeline_mode<synchronous>, transform_indices = @transform_2, window_bounds = array<i64: 128, 256>}, {pipeline_mode = #tpu.pipeline_mode<synchronous>, transform_indices = @transform_3, window_bounds = array<i64: 128, 128>}, {pipeline_mode = #tpu.pipeline_mode<synchronous>, transform_indices = @transform_4, window_bounds = array<i64: 128, 128>}, {pipeline_mode = #tpu.pipeline_mode<synchronous>, transform_indices = @transform_5, window_bounds = array<i64: 512, 1>}, {pipeline_mode = #tpu.pipeline_mode<synchronous>, transform_indices = @transform_6, window_bounds = array<i64: 1, 128>}, {transform_indices = @transform_7, window_bounds = array<i64: 1, 1, 128>}]} {
    %c0_i32 = arith.constant 0 : i32
    %0 = arith.cmpi eq, %arg1, %c0_i32 : i32
    %1 = arith.extui %0 : i1 to i32
    %c0_i32_0 = arith.constant 0 : i32
    %2 = arith.cmpi ne, %1, %c0_i32_0 : i32
    scf.if %2 {
      %cst_41 = arith.constant 0.000000e+00 : f32
      %63 = vector.broadcast %cst_41 : f32 to vector<128x1xf32>
      %c0_42 = arith.constant 0 : index
      %c0_43 = arith.constant 0 : index
      %64 = vector.load %arg10[%c0_42, %c0_43] : memref<128x1xf32, #tpu.memory_space<vmem>>, vector<128x1xf32>
      tpu.vector_store %arg10[%c0_42, %c0_43], %63 {strides = array<i32>} : memref<128x1xf32, #tpu.memory_space<vmem>>, vector<128x1xf32>,
    } else {
    }
    %c0 = arith.constant 0 : index
    %c0_1 = arith.constant 0 : index
    %3 = vector.load %arg7[%c0, %c0_1] : memref<512x1xf32, #tpu.memory_space<vmem>>, vector<256x1xf32>
    %c256 = arith.constant 256 : index
    %c0_2 = arith.constant 0 : index
    %4 = vector.load %arg7[%c256, %c0_2] : memref<512x1xf32, #tpu.memory_space<vmem>>, vector<128x1xf32>
    %c384 = arith.constant 384 : index
    %c0_3 = arith.constant 0 : index
    %5 = vector.load %arg7[%c384, %c0_3] : memref<512x1xf32, #tpu.memory_space<vmem>>, vector<128x1xf32>
    %c0_4 = arith.constant 0 : index
    %c0_5 = arith.constant 0 : index
    %c0_6 = arith.constant 0 : index
    %6 = vector.load %arg2[%c0_4, %c0_5, %c0_6] : memref<1x256x256xbf16, #tpu.memory_space<vmem>>, vector<1x256x128xbf16>
    %7 = vector.shape_cast %6 : vector<1x256x128xbf16> to vector<256x128xbf16>
    %c0_7 = arith.constant 0 : index
    %c0_8 = arith.constant 0 : index
    %8 = vector.load %arg3[%c0_7, %c0_8] : memref<256x256xbf16, #tpu.memory_space<vmem>>, vector<256x256xbf16>
    %cst = arith.constant dense<0.000000e+00> : vector<256x128xf32>
    %9 = tpu.matmul %8, %7, %cst {dimension_numbers = #tpu.dot_dimension_numbers<[1], [0], [0], [1], [0, 0, 1, 1], [], []>} : vector<256x256xbf16>, vector<256x128xbf16>, vector<256x128xf32> -> vector<256x128xf32>
    %10 = vector.broadcast %3 : vector<256x1xf32> to vector<256x128xf32>
    %11 = arith.addf %9, %10 : vector<256x128xf32>
    %cst_9 = arith.constant 0.000000e+00 : f32
    %12 = vector.broadcast %cst_9 : f32 to vector<256x128xf32>
    %13 = arith.maximumf %11, %12 : vector<256x128xf32>
    %14 = arith.truncf %13 : vector<256x128xf32> to vector<256x128xbf16>
    %c0_10 = arith.constant 0 : index
    %c0_11 = arith.constant 0 : index
    %15 = vector.load %arg4[%c0_10, %c0_11] : memref<128x256xbf16, #tpu.memory_space<vmem>>, vector<128x256xbf16>
    %cst_12 = arith.constant dense<0.000000e+00> : vector<128x128xf32>
    %16 = tpu.matmul %15, %14, %cst_12 {dimension_numbers = #tpu.dot_dimension_numbers<[1], [0], [0], [1], [0, 0, 1, 1], [], []>} : vector<128x256xbf16>, vector<256x128xbf16>, vector<128x128xf32> -> vector<128x128xf32>
    %17 = vector.broadcast %4 : vector<128x1xf32> to vector<128x128xf32>
    %18 = arith.addf %16, %17 : vector<128x128xf32>
    %cst_13 = arith.constant 0.000000e+00 : f32
    %19 = vector.broadcast %cst_13 : f32 to vector<128x128xf32>
    %20 = arith.maximumf %18, %19 : vector<128x128xf32>
    %21 = arith.truncf %20 : vector<128x128xf32> to vector<128x128xbf16>
    %c0_14 = arith.constant 0 : index
    %c0_15 = arith.constant 0 : index
    %22 = vector.load %arg5[%c0_14, %c0_15] : memref<128x128xbf16, #tpu.memory_space<vmem>>, vector<128x128xbf16>
    %cst_16 = arith.constant dense<0.000000e+00> : vector<128x128xf32>
    %23 = tpu.matmul %22, %21, %cst_16 {dimension_numbers = #tpu.dot_dimension_numbers<[1], [0], [0], [1], [0, 0, 1, 1], [], []>} : vector<128x128xbf16>, vector<128x128xbf16>, vector<128x128xf32> -> vector<128x128xf32>
    %24 = vector.broadcast %5 : vector<128x1xf32> to vector<128x128xf32>
    %25 = arith.addf %23, %24 : vector<128x128xf32>
    %cst_17 = arith.constant 0.000000e+00 : f32
    %26 = vector.broadcast %cst_17 : f32 to vector<128x128xf32>
    %27 = arith.maximumf %25, %26 : vector<128x128xf32>
    %c0_18 = arith.constant 0 : index
    %c0_19 = arith.constant 0 : index
    %c128 = arith.constant 128 : index
    %28 = vector.load %arg2[%c0_18, %c0_19, %c128] : memref<1x256x256xbf16, #tpu.memory_space<vmem>>, vector<1x256x128xbf16>
    %29 = vector.shape_cast %28 : vector<1x256x128xbf16> to vector<256x128xbf16>
    %c0_20 = arith.constant 0 : index
    %c0_21 = arith.constant 0 : index
    %30 = vector.load %arg3[%c0_20, %c0_21] : memref<256x256xbf16, #tpu.memory_space<vmem>>, vector<256x256xbf16>
    %cst_22 = arith.constant dense<0.000000e+00> : vector<256x128xf32>
    %31 = tpu.matmul %30, %29, %cst_22 {dimension_numbers = #tpu.dot_dimension_numbers<[1], [0], [0], [1], [0, 0, 1, 1], [], []>} : vector<256x256xbf16>, vector<256x128xbf16>, vector<256x128xf32> -> vector<256x128xf32>
    %32 = vector.broadcast %3 : vector<256x1xf32> to vector<256x128xf32>
    %33 = arith.addf %31, %32 : vector<256x128xf32>
    %cst_23 = arith.constant 0.000000e+00 : f32
    %34 = vector.broadcast %cst_23 : f32 to vector<256x128xf32>
    %35 = arith.maximumf %33, %34 : vector<256x128xf32>
    %36 = arith.truncf %35 : vector<256x128xf32> to vector<256x128xbf16>
    %c0_24 = arith.constant 0 : index
    %c0_25 = arith.constant 0 : index
    %37 = vector.load %arg4[%c0_24, %c0_25] : memref<128x256xbf16, #tpu.memory_space<vmem>>, vector<128x256xbf16>
    %cst_26 = arith.constant dense<0.000000e+00> : vector<128x128xf32>
    %38 = tpu.matmul %37, %36, %cst_26 {dimension_numbers = #tpu.dot_dimension_numbers<[1], [0], [0], [1], [0, 0, 1, 1], [], []>} : vector<128x256xbf16>, vector<256x128xbf16>, vector<128x128xf32> -> vector<128x128xf32>
    %39 = vector.broadcast %4 : vector<128x1xf32> to vector<128x128xf32>
    %40 = arith.addf %38, %39 : vector<128x128xf32>
    %cst_27 = arith.constant 0.000000e+00 : f32
    %41 = vector.broadcast %cst_27 : f32 to vector<128x128xf32>
    %42 = arith.maximumf %40, %41 : vector<128x128xf32>
    %43 = arith.truncf %42 : vector<128x128xf32> to vector<128x128xbf16>
    %c0_28 = arith.constant 0 : index
    %c0_29 = arith.constant 0 : index
    %44 = vector.load %arg5[%c0_28, %c0_29] : memref<128x128xbf16, #tpu.memory_space<vmem>>, vector<128x128xbf16>
    %cst_30 = arith.constant dense<0.000000e+00> : vector<128x128xf32>
    %45 = tpu.matmul %44, %43, %cst_30 {dimension_numbers = #tpu.dot_dimension_numbers<[1], [0], [0], [1], [0, 0, 1, 1], [], []>} : vector<128x128xbf16>, vector<128x128xbf16>, vector<128x128xf32> -> vector<128x128xf32>
    %46 = vector.broadcast %5 : vector<128x1xf32> to vector<128x128xf32>
    %47 = arith.addf %45, %46 : vector<128x128xf32>
    %cst_31 = arith.constant 0.000000e+00 : f32
    %48 = vector.broadcast %cst_31 : f32 to vector<128x128xf32>
    %49 = arith.maximumf %47, %48 : vector<128x128xf32>
    %cst_32 = arith.constant 0.000000e+00 : f32
    %50 = vector.broadcast %cst_32 : f32 to vector<128x1xf32>
    %cst_33 = arith.constant dense<0.000000e+00> : vector<128xf32>
    %51 = vector.multi_reduction <add>, %27, %cst_33 [1] : vector<128x128xf32> to vector<128xf32>
    %52 = vector.shape_cast %51 : vector<128xf32> to vector<128x1xf32>
    %53 = arith.addf %50, %52 : vector<128x1xf32>
    %cst_34 = arith.constant dense<0.000000e+00> : vector<128xf32>
    %54 = vector.multi_reduction <add>, %49, %cst_34 [1] : vector<128x128xf32> to vector<128xf32>
    %55 = vector.shape_cast %54 : vector<128xf32> to vector<128x1xf32>
    %56 = arith.addf %53, %55 : vector<128x1xf32>
    %c0_35 = arith.constant 0 : index
    %c0_36 = arith.constant 0 : index
    %57 = vector.load %arg10[%c0_35, %c0_36] : memref<128x1xf32, #tpu.memory_space<vmem>>, vector<128x1xf32>
    %58 = arith.addf %57, %56 : vector<128x1xf32>
    %c0_37 = arith.constant 0 : index
    %c0_38 = arith.constant 0 : index
    %59 = vector.load %arg10[%c0_37, %c0_38] : memref<128x1xf32, #tpu.memory_space<vmem>>, vector<128x1xf32>
    tpu.vector_store %arg10[%c0_37, %c0_38], %58 {strides = array<i32>} : memref<128x1xf32, #tpu.memory_space<vmem>>, vector<128x1xf32>,
    %c0_i32_39 = arith.constant 0 : i32
    %60 = arith.cmpi eq, %arg1, %c0_i32_39 : i32
    %61 = arith.extui %60 : i1 to i32
    %c0_i32_40 = arith.constant 0 : i32
    %62 = arith.cmpi ne, %61, %c0_i32_40 : i32
    scf.if %62 {
      %c0_41 = arith.constant 0 : index
      %c0_42 = arith.constant 0 : index
      %63 = vector.load %arg10[%c0_41, %c0_42] : memref<128x1xf32, #tpu.memory_space<vmem>>, vector<128x1xf32>
      %cst_43 = arith.constant 3.906250e-03 : f32
      %64 = vector.broadcast %cst_43 : f32 to vector<128x1xf32>
      %65 = arith.mulf %63, %64 : vector<128x1xf32>
      %c0_44 = arith.constant 0 : index
      %c0_45 = arith.constant 0 : index
      %66 = vector.load %arg6[%c0_44, %c0_45] : memref<128x128xf32, #tpu.memory_space<vmem>>, vector<128x128xf32>
      %67 = vector.broadcast %65 : vector<128x1xf32> to vector<128x128xf32>
      %68 = arith.mulf %66, %67 : vector<128x128xf32>
      %cst_46 = arith.constant dense<0.000000e+00> : vector<128xf32>
      %69 = vector.multi_reduction <add>, %68, %cst_46 [0] : vector<128x128xf32> to vector<128xf32>
      %70 = vector.shape_cast %69 : vector<128xf32> to vector<1x128xf32>
      %c0_47 = arith.constant 0 : index
      %c0_48 = arith.constant 0 : index
      %71 = vector.load %arg8[%c0_47, %c0_48] : memref<1x128xf32, #tpu.memory_space<vmem>>, vector<1x128xf32>
      %72 = arith.addf %70, %71 : vector<1x128xf32>
      %c0_49 = arith.constant 0 : index
      %c0_50 = arith.constant 0 : index
      %c0_51 = arith.constant 0 : index
      %73 = vector.load %arg9[%c0_49, %c0_50, %c0_51] : memref<1x1x128xf32, #tpu.memory_space<vmem>>, vector<1x1x128xf32>
      %74 = vector.shape_cast %73 : vector<1x1x128xf32> to vector<1x128xf32>
      %75 = vector.shape_cast %72 : vector<1x128xf32> to vector<1x1x128xf32>
      tpu.vector_store %arg9[%c0_49, %c0_50, %c0_51], %75 {strides = array<i32>} : memref<1x1x128xf32, #tpu.memory_space<vmem>>, vector<1x1x128xf32>,
    } else {
    }
    return
  }
  func.func @transform_0(%arg0: i32, %arg1: i32) -> (i32, i32, i32) {
    %c0_i32 = arith.constant 0 : i32
    %c0_i32_0 = arith.constant 0 : i32
    return %arg0, %c0_i32, %arg1 : i32, i32, i32
  }
  func.func @transform_1(%arg0: i32, %arg1: i32) -> (i32, i32) {
    %c0_i32 = arith.constant 0 : i32
    %c0_i32_0 = arith.constant 0 : i32
    %c0_i32_1 = arith.constant 0 : i32
    return %c0_i32, %c0_i32_0 : i32, i32
  }
  func.func @transform_2(%arg0: i32, %arg1: i32) -> (i32, i32) {
    %c0_i32 = arith.constant 0 : i32
    %c0_i32_0 = arith.constant 0 : i32
    %c0_i32_1 = arith.constant 0 : i32
    return %c0_i32, %c0_i32_0 : i32, i32
  }
  func.func @transform_3(%arg0: i32, %arg1: i32) -> (i32, i32) {
    %c0_i32 = arith.constant 0 : i32
    %c0_i32_0 = arith.constant 0 : i32
    %c0_i32_1 = arith.constant 0 : i32
    return %c0_i32, %c0_i32_0 : i32, i32
  }
  func.func @transform_4(%arg0: i32, %arg1: i32) -> (i32, i32) {
    %c0_i32 = arith.constant 0 : i32
    %c0_i32_0 = arith.constant 0 : i32
    %c0_i32_1 = arith.constant 0 : i32
    return %c0_i32, %c0_i32_0 : i32, i32
  }
  func.func @transform_5(%arg0: i32, %arg1: i32) -> (i32, i32) {
    %c0_i32 = arith.constant 0 : i32
    %c0_i32_0 = arith.constant 0 : i32
    %c0_i32_1 = arith.constant 0 : i32
    return %c0_i32, %c0_i32_0 : i32, i32
  }
  func.func @transform_6(%arg0: i32, %arg1: i32) -> (i32, i32) {
    %c0_i32 = arith.constant 0 : i32
    %c0_i32_0 = arith.constant 0 : i32
    %c0_i32_1 = arith.constant 0 : i32
    return %c0_i32, %c0_i32_0 : i32, i32
  }
  func.func @transform_7(%arg0: i32, %arg1: i32) -> (i32, i32, i32) {
    %c0_i32 = arith.constant 0 : i32
    %c0_i32_0 = arith.constant 0 : i32
    %c0_i32_1 = arith.constant 0 : i32
    return %arg0, %c0_i32, %c0_i32_0 : i32, i32, i32
  }
}

</mosaic_0001>

<bundles_post_ra>
// kernel: tpu_custom_call.1
= control target key start
LH: loop header
LB: loop body
LE: loop exit
PB: predicated region body
PF: predicated region fallthrough
CT: control target
= control target key end

     0   :  { %s4679_s0 = inlined_call_operand.vmem [shape: bf16[2,256,256], index: 0, kind: input, shape index: {}]   ;;  %s4680_s1 = inlined_call_operand.hbm [shape: bf16[256,256], index: 1, kind: input, shape index: {}]   ;;  %s4681_s2 = inlined_call_operand.hbm [shape: bf16[128,256], index: 2, kind: input, shape index: {}]   ;;  %s4682_s3 = inlined_call_operand.hbm [shape: bf16[128,128], index: 3, kind: input, shape index: {}]   ;;  %s4683_s4 = inlined_call_operand.hbm [shape: f32[128,128], index: 4, kind: input, shape index: {}]   ;;  %s4684_s5 = inlined_call_operand.vmem [shape: f32[512,1], index: 5, kind: input, shape index: {}]   ;;  %s4685_s6 = inlined_call_operand.vmem [shape: f32[1,128], index: 6, kind: input, shape index: {}]   ;;  %s4686_s7 = inlined_call_operand.hbm [shape: f32[2,1,128], index: 7, kind: output, shape index: {}]  }
   0x1   :  { %4740 = sst [smem:[#allocation64_spill]] %s4681_s2 }
   0x2   :  { %12 = vsyncpa [#allocation4], 0 }
   0x3   :  { %13 = vsyncpa [#allocation7], 0 }
   0x4   :  { %14 = vsyncpa [#allocation10], 0 }
   0x5   :  { %15 = vsyncpa [#allocation5], 0 }
   0x6   :  { %17 = vsyncpa [#allocation5 + $0x1], 0  ;;  %s3749_s24 = smov 0   ;;  %s3751_s25 = smov 0  }
   0x7   :  { %s3753_s26 = smov 0   ;;  %s3755_s27 = smov 0  }
   0x8   :  { %s3757_s28 = smov 0   ;;  %s3759_s29 = smov 0  }
   0x9 LB: > { %4741 = sst [smem:[#allocation16_spill]] %s3684_s26  ;;  %s2702_s30 = sadd.s32 4294967295, %s3696_s29   ;;  %s3696_s29 = sphi %s3759_s29, %s23_s29   ;;  %s3692_s28 = sphi %s3757_s28, %s4849_s28   ;;  %s3688_s27 = sphi %s3755_s27, %s4848_s27   ;;  %s3684_s26 = sphi %s3753_s26, %s4847_s26   ;;  %s3680_s25 = sphi %s3751_s25, %s4851_s25   ;;  %s3676_s24 = sphi %s3749_s24, %s4850_s24  }
   0xa   : > { %4742 = sst [smem:[#allocation17_spill]] %s3692_s28  ;;  %s2703_s8 = sadd.s32 4294967294, %s3696_s29  }
   0xb   : > { %s35_s9 = sadd.s32 1, %s3692_s28  ;;  %s196_s10 = sadd.s32 1, %s3684_s26 }
   0xc   : > { %p37_p0 = scmp.ge.s32.totalorder %s35_s9, 2  ;;  %p206_p1 = scmp.ne.s32.totalorder %s3684_s26, %s3680_s25 }
   0xd   : > { %p207_p2 = scmp.eq.s32.totalorder %s2702_s30, 1  ;;  %p212_p3 = scmp.ne.s32.totalorder %s3680_s25, %s3676_s24 }
   0xe   : > { %s4853_s9 = smov (%p37_p0, %s35_s9), 0  ;;  %p213_p5 = scmp.eq.s32.totalorder %s2703_s8, 1 }
   0xf   : > { %4743 = sst [smem:[#allocation18_spill]] %s4853_s9  ;;  %p3789_p4 = por %p207_p2, %p206_p1 }
  0x10   : > { %s193_s12 = ssub.s32 %s3692_s28, %s4853_s9  ;;  %p2704_p6 = scmp.ge.s32.totalorder %s3696_s29, 1 }
  0x11   : > { %s4744_s11 = scalar_select %p3789_p4, 1, 0 }
  0x12   : > { %p194_p7 = scmp.eq.s32.totalorder %s193_s12, 0  ;;  %p3796_p8 = por %p213_p5, %p212_p3 }
  0x13   : > { %p220_p9 = scmp.lt.s32.totalorder %s3696_s29, 3  ;;  %p3808_p11 = scmp.eq.s32.totalorder %s2702_s30, 0 }
  0x14   : > { %s4745_s13 = scalar_select %p3796_p8, 1, 0 }
  0x15   : > { %s3802_s14 = scalar_select %p194_p7, %s3684_s26, %s196_s10  }
  0x16   : > { %p3804_p10 = pnand %p2704_p6, %p220_p9  ;;  %s3698_s17 = smov [#allocation6]  }
  0x17   : > { %4746 = sst [smem:[#allocation19_spill]] %s3802_s14  ;;  %s245_s18 = sshll.u32 %s3698_s17, 4  ;;  %s246_s18 = int_to_ptr.vmem [resolvable:$true] %s245_s18 }
  0x18   : > { %s4747_s15 = scalar_select %p3804_p10, 1, 0 }
  0x19   : > { %s4748_s16 = scalar_select %p3808_p11, 1, 0 }
  0x1a   : > { %p3275_p12 = pneg %p3804_p10  ;;  %s3699_s20 = smov [#allocation3]  }
  0x1b   : > { %s232_s21 = sshll.u32 %s3699_s20, 4  ;;  %s4750_s2 = sld [smem:[#allocation64_spill]]  ;;  %s233_s21 = int_to_ptr.vmem [resolvable:$true] %s232_s21 }
  0x1c   : > { %p3816_p13 = pnand %p3808_p11, %p3275_p12 }
  0x1e   : > { %p3828_p1 = pneg %p3816_p13 }
  0x21   : > { %s3494_s30 = scalar_lea.hbm %s4750_s2, 2048 }
  0x22   : > { %p3495_p0 = scmp.ne.s32.totalorder %s4750_s2, %s3494_s30  ;;  %p3501_p5 = scmp.lt.u32.totalorder %s3494_s30, %s4750_s2 }
  0x24   : > { %p3497_p2 = pnand %p3828_p1, %p3495_p0 }
  0x26   : > { %p3498_p3 = pneg %p3497_p2 }
  0x28   : > { %p3503_p6 = pnand %p3501_p5, %p3498_p3 }
  0x2a   : > { %3506 = shalt.err (!%p3503_p6)
}
  0x2b   : > { %s3507_s20 = scalar_lea.vmem %s246_s18, 2048  ;;  %p3515_p8 = scmp.lt.s32.totalorder %s246_s18, %s246_s18 }
  0x2c   : > { %p3508_p7 = scmp.ne.s32.totalorder %s246_s18, %s3507_s20  ;;  %p3516_p4 = scmp.lt.s32.totalorder %s3507_s20, %s3507_s20 }
  0x2e   : > { %p3510_p9 = pnand %p3508_p7, %p3828_p1  ;;  %p3517_p11 = por %p3516_p4, %p3515_p8 }
  0x30   : > { %p3511_p12 = pneg %p3510_p9 }
  0x32   : > { %p3518_p10 = pnand %p3517_p11, %p3511_p12 }
  0x34   : > { %3521 = shalt.err (!%p3518_p10)
}
  0x35   : > { %s4694_s22 = smov 128   ;;  %s4695_s23 = smov 8  }
  0x36   : > { %3281 = dma.hbm_to_vmem [thread:$0]  (!%p3816_p13), %s4750_s2, 2048, %s246_s18, [#allocation7], %s4694_s22, %s4694_s22, %s4695_s23  }
  0x37   : > { %s3522_s17 = scalar_lea.hbm %s4680_s1, 4096 }
  0x38   : > { %p3523_p4 = scmp.ne.s32.totalorder %s4680_s1, %s3522_s17  ;;  %p3529_p11 = scmp.lt.u32.totalorder %s3522_s17, %s4680_s1 }
  0x3a   : > { %p3525_p8 = pnand %p3523_p4, %p3828_p1 }
  0x3c   : > { %p3526_p10 = pneg %p3525_p8 }
  0x3e   : > { %p3531_p0 = pnand %p3529_p11, %p3526_p10 }
  0x40   : > { %3534 = shalt.err (!%p3531_p0)
}
  0x41   : > { %s3535_s9 = scalar_lea.vmem %s233_s21, 4096  ;;  %p3543_p6 = scmp.lt.s32.totalorder %s233_s21, %s233_s21 }
  0x42   : > { %p3536_p2 = scmp.ne.s32.totalorder %s233_s21, %s3535_s9  ;;  %p3544_p7 = scmp.lt.s32.totalorder %s3535_s9, %s3535_s9 }
  0x44   : > { %p3538_p3 = pnand %p3536_p2, %p3828_p1  ;;  %p3545_p9 = por %p3544_p7, %p3543_p6 }
  0x46   : > { %p3539_p5 = pneg %p3538_p3 }
  0x48   : > { %p3546_p12 = pnand %p3545_p9, %p3539_p5 }
  0x4a   : > { %3549 = shalt.err (!%p3546_p12)
}
  0x4b   : > { %3278 = dma.hbm_to_vmem [thread:$0]  (!%p3816_p13), %s4680_s1, 4096, %s233_s21, [#allocation4], %s4694_s22, %s4694_s22, %s4695_s23  }
  0x4c   : > { %s3702_s14 = smov [#allocation8]   ;;  %s3550_s10 = scalar_lea.hbm %s4682_s3, 1024 }
  0x4d   : > { %s258_s18 = sshll.u32 %s3702_s14, 4  ;;  %p3551_p4 = scmp.ne.s32.totalorder %s4682_s3, %s3550_s10  ;;  %s259_s18 = int_to_ptr.vmem [resolvable:$true] %s258_s18 }
  0x4e   : > { %p3557_p11 = scmp.lt.u32.totalorder %s3550_s10, %s4682_s3 }
  0x4f   : > { %p3553_p8 = pnand %p3551_p4, %p3828_p1 }
  0x51   : > { %p3554_p10 = pneg %p3553_p8 }
  0x53   : > { %p3559_p0 = pnand %p3557_p11, %p3554_p10 }
  0x55   : > { %3562 = shalt.err (!%p3559_p0)
}
  0x56   : > { %s3563_s21 = scalar_lea.vmem %s259_s18, 1024  ;;  %p3571_p6 = scmp.lt.s32.totalorder %s259_s18, %s259_s18 }
  0x57   : > { %p3564_p2 = scmp.ne.s32.totalorder %s259_s18, %s3563_s21  ;;  %p3572_p7 = scmp.lt.s32.totalorder %s3563_s21, %s3563_s21 }
  0x59   : > { %p3566_p3 = pnand %p3564_p2, %p3828_p1  ;;  %p3573_p9 = por %p3572_p7, %p3571_p6 }
  0x5b   : > { %p3567_p5 = pneg %p3566_p3 }
  0x5d   : > { %p3574_p12 = pnand %p3573_p9, %p3567_p5 }
  0x5f   : > { %3577 = shalt.err (!%p3574_p12)
}
  0x60   : > { %s3703_s26 = smov 64   ;;  %s3704_s28 = smov 4  }
  0x61   : > { %3284 = dma.hbm_to_vmem [thread:$0]  (!%p3816_p13), %s4682_s3, 1024, %s259_s18, [#allocation7], %s3703_s26, %s3703_s26, %s3704_s28  }
  0x62   : > { %s3705_s30 = smov [#allocation9]   ;;  %s3578_s20 = scalar_lea.hbm %s4683_s4, 2048 }
  0x63   : > { %s271_s8 = sshll.u32 %s3705_s30, 4  ;;  %p3579_p4 = scmp.ne.s32.totalorder %s4683_s4, %s3578_s20  ;;  %s272_s8 = int_to_ptr.vmem [resolvable:$true] %s271_s8 }
  0x64   : > { %p3585_p11 = scmp.lt.u32.totalorder %s3578_s20, %s4683_s4 }
  0x65   : > { %p3581_p8 = pnand %p3579_p4, %p3828_p1 }
  0x67   : > { %p3582_p10 = pneg %p3581_p8 }
  0x69   : > { %p3587_p0 = pnand %p3585_p11, %p3582_p10 }
  0x6b   : > { %3590 = shalt.err (!%p3587_p0)
}
  0x6c   : > { %s3591_s18 = scalar_lea.vmem %s272_s8, 2048  ;;  %p3599_p6 = scmp.lt.s32.totalorder %s272_s8, %s272_s8 }
  0x6d   : > { %p3592_p2 = scmp.ne.s32.totalorder %s272_s8, %s3591_s18  ;;  %p3600_p7 = scmp.lt.s32.totalorder %s3591_s18, %s3591_s18 }
  0x6f   : > { %p3594_p3 = pnand %p3592_p2, %p3828_p1  ;;  %p3601_p9 = por %p3600_p7, %p3599_p6 }
  0x71   : > { %p3595_p5 = pneg %p3594_p3 }
  0x73   : > { %p3602_p12 = pnand %p3601_p9, %p3595_p5 }
  0x75   : > { %3605 = shalt.err (!%p3602_p12)
}
  0x76   : > { %s4752_s26 = smov 8   ;;  %s4753_s28 = smov 128  }
  0x77   : > { %3287 = dma.hbm_to_vmem [thread:$0]  (!%p3816_p13), %s4683_s4, 2048, %s272_s8, [#allocation10], %s4753_s28, %s4753_s28, %s4752_s26  }
  0x78   : > { %p4754_p4 = scmp.ne.s32.totalorder %s4747_s15, 0 }
  0x7a   : > { %306 = sbr.rel (%p4754_p4) target bundleno = 2059 (0x80b), region = 48 }
  0x81   : > { %p4755_p1 = scmp.ne.s32.totalorder %s4748_s16, 0 }
  0x83   : > { %3659 = dma.done.wait (%p4755_p1), [#allocation4], 4096  }
  0x84   : > { %3661 = vsyncadd (%p4755_p1), [#allocation4], 4294963200 }
  0x85   : > { %3663 = dma.done.wait (%p4755_p1), [#allocation7], 3072  }
  0x86   : > { %3665 = vsyncadd (%p4755_p1), [#allocation7], 4294964224 }
  0x87   : > { %3667 = dma.done.wait (%p4755_p1), [#allocation10], 2048  }
  0x88   : > { %3669 = vsyncadd (%p4755_p1), [#allocation10], 4294965248  ;;  %p354_p13 = scmp.lt.s32.totalorder %s3688_s27, 1  ;;  %v3706_v0 = vmov 0   ;;  %v3379_v12 = vld [vmem:[#allocation3 + $0x4] ss:$8 sps:$4 sm:$0xff]  }
  0x89   : > { %3360 = vset.pattern.permute.xlu1 %v3706_v0  ;;  %3359 = vset.pattern.permute.xlu0 %v3706_v0  ;;  %v401_v15 = vld [vmem:[%s4684_s5 + $0x80] sm:$0xff]  ;;  %v402_v18 = vld [vmem:[%s4684_s5 + $0x88] sm:$0xff]  ;;  %v403_v22 = vld [vmem:[%s4684_s5 + $0x90] sm:$0xff]  ;;  %vm368_vm0 = vcmask 7168   ;;  %s2805_s22 = sshll.u32 %s3688_s27, 4  ;;  %p4844_p10 = scmp.ne.s32.totalorder %s4744_s11, 0 }
  0x8a   : > { %s355_s15 = scalar_select %p354_p13, %s3688_s27, 1  ;;  %961 = vmatprep.mubr.bf16.mxu0 %v3379_v12  ;;  %v385_v16 = vld [vmem:[%s4684_s5] sm:$0xff]  ;;  %595 = vperm.xlu0 %3359, %v401_v15   ;;  %v386_v19 = vld [vmem:[%s4684_s5 + $0x8] sm:$0xff]  ;;  %v404_v23 = vld [vmem:[%s4684_s5 + $0x98] sm:$0xff] }
  0x8b   : > { %515 = vperm.xlu1 %3360, %v385_v16   ;;  %v3377_v24 = vld [vmem:[#allocation3] ss:$8 sps:$4 sm:$0xff]   ;;  %v3380_v25 = vld [vmem:[#allocation3 + $0x14] ss:$8 sps:$4 sm:$0xff]   ;;  %v3382_v30 = vld [vmem:[#allocation3 + $0x10] ss:$8 sps:$4 sm:$0xff]   ;;  %s4632_s2 = scalar_lea.hbm %s4686_s7, %s2805_s22 }
  0x8c   : > { %s2808_s19 = sshll.u32 %s355_s15, 8  ;;  %v387_v26 = vld [vmem:[%s4684_s5 + $0x10] sm:$0xff]  ;;  %v388_v27 = vld [vmem:[%s4684_s5 + $0x18] sm:$0xff]  ;;  %v405_v28 = vld [vmem:[%s4684_s5 + $0xa0] sm:$0xff]  ;;  %s3708_s27 = smov [#allocation11]  }
  0x8d   : > { %s3926_s14 = scalar_lea.vmem %s4679_s0, %s2808_s19  ;;  %v406_v29 = vld [vmem:[%s4684_s5 + $0xa8] sm:$0xff]  ;;  %v389_v32 = vld [vmem:[%s4684_s5 + $0x20] sm:$0xff]  ;;  %v407_v34 = vld [vmem:[%s4684_s5 + $0xb0] sm:$0xff]  ;;  %s3610_s8 = sshll.u32 %s3708_s27, 4  ;;  %s3611_s8 = int_to_ptr.vmem [resolvable:$false] %s3610_s8 }
  0x8e   : > { %v3361_v1 = vld [vmem:[%s3926_s14 + $0x80] ss:$8 sps:$4 sm:$0xff]   ;;  %v3363_v3 = vld [vmem:[%s3926_s14 + $0x90] ss:$8 sps:$4 sm:$0xff]   ;;  %600 = vperm.xlu0 %3359, %v402_v18   ;;  %v3383_v31 = vld [vmem:[#allocation3 + $0x24] ss:$8 sps:$4 sm:$0xff]  }
  0x8f   : > { %v3362_v2 = vld [vmem:[%s3926_s14] ss:$8 sps:$4 sm:$0xff]   ;;  %2809 = vmatprep.subr.bf16.mxu0 %v3361_v1  ;;  %v3364_v4 = vld [vmem:[%s3926_s14 + $0x10] ss:$8 sps:$4 sm:$0xff]   ;;  %520 = vperm.xlu1 %3360, %v386_v19   ;;  %v3386_v37 = vld [vmem:[#allocation3 + $0x34] ss:$8 sps:$4 sm:$0xff]  }
  0x90   : > { %2810 = vmatpush3.bf16.msra.mxu0 %v3362_v2  ;;  %v3365_v5 = vld [vmem:[%s3926_s14 + $0xa0] ss:$8 sps:$4 sm:$0xff]   ;;  %v3367_v7 = vld [vmem:[%s3926_s14 + $0xb0] ss:$8 sps:$4 sm:$0xff]   ;;  %v3389_v43 = vld [vmem:[#allocation3 + $0x44] ss:$8 sps:$4 sm:$0xff]  }
  0x91   : > { %2811 = vmatprep.subr.bf16.mxu0 %v3363_v3  ;;  %v3366_v6 = vld [vmem:[%s3926_s14 + $0x20] ss:$8 sps:$4 sm:$0xff]   ;;  %v3368_v8 = vld [vmem:[%s3926_s14 + $0x30] ss:$8 sps:$4 sm:$0xff]   ;;  %v3392_v49 = vld [vmem:[#allocation3 + $0x54] ss:$8 sps:$4 sm:$0xff]  }
  0x92   : > { %v3369_v9 = vld [vmem:[%s3926_s14 + $0xc0] ss:$8 sps:$4 sm:$0xff]   ;;  %v3371_v11 = vld [vmem:[%s3926_s14 + $0xd0] ss:$8 sps:$4 sm:$0xff]   ;;  %605 = vperm.xlu0 %3359, %v403_v22   ;;  %v3395_v55 = vld [vmem:[#allocation3 + $0x64] ss:$8 sps:$4 sm:$0xff]  }
  0x93   : > { %v3370_v10 = vld [vmem:[%s3926_s14 + $0x40] ss:$8 sps:$4 sm:$0xff]   ;;  %v3372_v13 = vld [vmem:[%s3926_s14 + $0x50] ss:$8 sps:$4 sm:$0xff]   ;;  %610 = vperm.xlu1 %3360, %v404_v23   ;;  %v3398_v61 = vld [vmem:[#allocation3 + $0x74] ss:$8 sps:$4 sm:$0xff]  }
  0x94   : > { %2812 = vmatpush3.bf16.msra.mxu0 %v3364_v4  ;;  %v3373_v14 = vld [vmem:[%s3926_s14 + $0xe0] ss:$8 sps:$4 sm:$0xff]   ;;  %v3375_v20 = vld [vmem:[%s3926_s14 + $0xf0] ss:$8 sps:$4 sm:$0xff]   ;;  %v3401_v3 = vld [vmem:[#allocation3 + $0x84] ss:$8 sps:$4 sm:$0xff]  }
  0x95   : > { %2813 = vmatprep.subr.bf16.mxu0 %v3365_v5  ;;  %v3374_v17 = vld [vmem:[%s3926_s14 + $0x60] ss:$8 sps:$4 sm:$0xff]   ;;  %v3376_v21 = vld [vmem:[%s3926_s14 + $0x70] ss:$8 sps:$4 sm:$0xff]   ;;  %v3407_v15 = vld [vmem:[#allocation3 + $0xa4] ss:$8 sps:$4 sm:$0xff]  }
  0x96   : > { %525 = vperm.xlu0 %3359, %v387_v26   ;;  %v390_v33 = vld [vmem:[%s4684_s5 + $0x28] sm:$0xff]  ;;  %v408_v35 = vld [vmem:[%s4684_s5 + $0xb8] sm:$0xff]  ;;  %v391_v38 = vld [vmem:[%s4684_s5 + $0x30] sm:$0xff]  ;;  %s3612_s10 = scalar_lea.vmem %s3611_s8, 32 }
  0x97   : > { %530 = vperm.xlu1 %3360, %v388_v27   ;;  %v3385_v36 = vld [vmem:[#allocation3 + $0x20] ss:$8 sps:$4 sm:$0xff]   ;;  %v392_v39 = vld [vmem:[%s4684_s5 + $0x38] sm:$0xff]  ;;  %v411_v46 = vld [vmem:[%s4684_s5 + $0xd0] sm:$0xff] }
  0x98   : > { %2814 = vmatpush3.bf16.msra.mxu0 %v3366_v6  ;;  %v409_v40 = vld [vmem:[%s4684_s5 + $0xc0] sm:$0xff]  ;;  %v410_v41 = vld [vmem:[%s4684_s5 + $0xc8] sm:$0xff]  ;;  %v3388_v42 = vld [vmem:[#allocation3 + $0x30] ss:$8 sps:$4 sm:$0xff]  }
  0x99   : > { %2815 = vmatprep.subr.bf16.mxu0 %v3367_v7  ;;  %v393_v44 = vld [vmem:[%s4684_s5 + $0x40] sm:$0xff]  ;;  %v394_v45 = vld [vmem:[%s4684_s5 + $0x48] sm:$0xff]  ;;  %v412_v47 = vld [vmem:[%s4684_s5 + $0xd8] sm:$0xff] }
  0x9a   : > { %615 = vperm.xlu0 %3359, %v405_v28   ;;  %v3391_v48 = vld [vmem:[#allocation3 + $0x40] ss:$8 sps:$4 sm:$0xff]   ;;  %v395_v50 = vld [vmem:[%s4684_s5 + $0x50] sm:$0xff]  ;;  %v396_v51 = vld [vmem:[%s4684_s5 + $0x58] sm:$0xff] }
  0x9b   : > { %620 = vperm.xlu1 %3360, %v406_v29   ;;  %v413_v52 = vld [vmem:[%s4684_s5 + $0xe0] sm:$0xff]  ;;  %v414_v53 = vld [vmem:[%s4684_s5 + $0xe8] sm:$0xff]  ;;  %v3394_v54 = vld [vmem:[#allocation3 + $0x50] ss:$8 sps:$4 sm:$0xff]  }
  0x9c   : > { %2816 = vmatpush3.bf16.msra.mxu0 %v3368_v8  ;;  %v397_v56 = vld [vmem:[%s4684_s5 + $0x60] sm:$0xff]  ;;  %v398_v57 = vld [vmem:[%s4684_s5 + $0x68] sm:$0xff]  ;;  %v415_v58 = vld [vmem:[%s4684_s5 + $0xf0] sm:$0xff] }
  0x9d   : > { %2817 = vmatprep.subr.bf16.mxu0 %v3369_v9  ;;  %v416_v59 = vld [vmem:[%s4684_s5 + $0xf8] sm:$0xff]  ;;  %v3397_v60 = vld [vmem:[#allocation3 + $0x60] ss:$8 sps:$4 sm:$0xff]   ;;  %v399_v62 = vld [vmem:[%s4684_s5 + $0x70] sm:$0xff] }
  0x9e   : > { %535 = vperm.xlu0 %3359, %v389_v32   ;;  %v400_v63 = vld [vmem:[%s4684_s5 + $0x78] sm:$0xff]  ;;  %v417_v0 = vld [vmem:[%s4684_s5 + $0x100] sm:$0xff]  ;;  %v418_v1 = vld [vmem:[%s4684_s5 + $0x108] sm:$0xff] }
  0x9f   : > { %540 = vperm.xlu1 %3360, %v390_v33   ;;  %v3400_v2 = vld [vmem:[#allocation3 + $0x70] ss:$8 sps:$4 sm:$0xff]   ;;  %v421_v6 = vld [vmem:[%s4684_s5 + $0x120] sm:$0xff]  ;;  %v422_v7 = vld [vmem:[%s4684_s5 + $0x128] sm:$0xff] }
  0xa0   : > { %2818 = vmatpush3.bf16.msra.mxu0 %v3370_v10  ;;  %v419_v4 = vld [vmem:[%s4684_s5 + $0x110] sm:$0xff]  ;;  %v420_v5 = vld [vmem:[%s4684_s5 + $0x118] sm:$0xff]  ;;  %v3403_v8 = vld [vmem:[#allocation3 + $0x80] ss:$8 sps:$4 sm:$0xff]  }
  0xa1   : > { %2819 = vmatprep.subr.bf16.mxu0 %v3371_v11  ;;  %v3404_v9 = vld [vmem:[#allocation3 + $0x94] ss:$8 sps:$4 sm:$0xff]   ;;  %v425_v12 = vld [vmem:[%s4684_s5 + $0x140] sm:$0xff]  ;;  %v430_v19 = vld [vmem:[%s4684_s5 + $0x168] sm:$0xff] }
  0xa2   : > { %625 = vperm.xlu0 %3359, %v407_v34   ;;  %v423_v10 = vld [vmem:[%s4684_s5 + $0x130] sm:$0xff]  ;;  %v424_v11 = vld [vmem:[%s4684_s5 + $0x138] sm:$0xff]  ;;  %v429_v18 = vld [vmem:[%s4684_s5 + $0x160] sm:$0xff] }
  0xa3   : > { %630 = vperm.xlu1 %3360, %v408_v35   ;;  %v427_v16 = vld [vmem:[%s4684_s5 + $0x150] sm:$0xff]  ;;  %v432_v23 = vld [vmem:[%s4684_s5 + $0x178] sm:$0xff]  ;;  %v4102_v27 = vld [vmem:[#allocation3 + $0xc4] ss:$8 sps:$4 sm:$0xff]  }
  0xa4   : > { %2820 = vmatpush3.bf16.msra.mxu0 %v3372_v13  ;;  %v426_v13 = vld [vmem:[%s4684_s5 + $0x148] sm:$0xff]  ;;  %v431_v22 = vld [vmem:[%s4684_s5 + $0x170] sm:$0xff]  ;;  %v436_v29 = vld [vmem:[%s4684_s5 + $0x198] sm:$0xff] }
  0xa5   : > { %2821 = vmatprep.subr.bf16.mxu0 %v3373_v14  ;;  %v3406_v14 = vld [vmem:[#allocation3 + $0x90] ss:$8 sps:$4 sm:$0xff]   ;;  %v4118_v32 = vld [vmem:[#allocation3 + $0xc0] ss:$8 sps:$4 sm:$0xff]   ;;  %v4120_v33 = vld [vmem:[#allocation3 + $0xd4] ss:$8 sps:$4 sm:$0xff]  }
  0xa6   : > { %545 = vperm.xlu0 %3359, %v391_v38   ;;  %v4100_v26 = vld [vmem:[#allocation3 + $0xb0] ss:$8 sps:$4 sm:$0xff]  }
  0xa7   : > { %550 = vperm.xlu1 %3360, %v392_v39   ;;  %v435_v28 = vld [vmem:[%s4684_s5 + $0x190] sm:$0xff]  ;;  %v440_v35 = vld [vmem:[%s4684_s5 + $0x1b8] sm:$0xff]  ;;  %v4138_v39 = vld [vmem:[#allocation3 + $0xe4] ss:$8 sps:$4 sm:$0xff]  }
  0xa8   : > { %2822 = vmatpush3.bf16.msra.mxu0 %v3374_v17  ;;  %v428_v17 = vld [vmem:[%s4684_s5 + $0x158] sm:$0xff]  ;;  %v439_v34 = vld [vmem:[%s4684_s5 + $0x1b0] sm:$0xff] }
  0xa9   : > { %2823 = vmatprep.subr.bf16.mxu0 %v3375_v20  ;;  %v4082_v20 = vld [vmem:[#allocation3 + $0xa0] ss:$8 sps:$4 sm:$0xff]   ;;  %v4136_v38 = vld [vmem:[#allocation3 + $0xd0] ss:$8 sps:$4 sm:$0xff]  }
  0xaa   : > { %635 = vperm.xlu0 %3359, %v409_v40   ;;  %v443_v40 = vld [vmem:[%s4684_s5 + $0x1d0] sm:$0xff] }
  0xab   : > { %640 = vperm.xlu1 %3360, %v410_v41   ;;  %v444_v41 = vld [vmem:[%s4684_s5 + $0x1d8] sm:$0xff] }
  0xac   : > { %2824 = vmatpush3.bf16.msra.mxu0 %v3376_v21  ;;  %v4084_v21 = vld [vmem:[#allocation3 + $0xb4] ss:$8 sps:$4 sm:$0xff]  }
  0xae   : > { %555 = vperm.xlu0 %3359, %v393_v44   ;;  %v4154_v44 = vld [vmem:[#allocation3 + $0xe0] ss:$8 sps:$4 sm:$0xff]  }
  0xaf   : > { %962 = vmatmul.mubr.bf16.vlgmr.msra.gmra.mrb[0].mxu0 %v3377_v24  ;;  %560 = vperm.xlu1 %3360, %v394_v45   ;;  %v433_v24 = vld [vmem:[%s4684_s5 + $0x180] sm:$0xff]  ;;  %v4156_v45 = vld [vmem:[#allocation3 + $0xf4] ss:$8 sps:$4 sm:$0xff]  }
  0xb0   : > { %969 = vmatprep.mubr.bf16.mxu0 %v3380_v25  ;;  %v434_v25 = vld [vmem:[%s4684_s5 + $0x188] sm:$0xff] }
  0xb2   : > { %645 = vperm.xlu0 %3359, %v411_v46   ;;  %v447_v46 = vld [vmem:[%s4684_s5 + $0x1f0] sm:$0xff] }
  0xb3   : > { %650 = vperm.xlu1 %3360, %v412_v47   ;;  %v448_v47 = vld [vmem:[%s4684_s5 + $0x1f8] sm:$0xff] }
  0xb6   : > { %565 = vperm.xlu0 %3359, %v395_v50  }
  0xb7   : > { %970 = vmatmul.mubr.bf16.gmra.mrb[4].mxu0 %v3382_v30  ;;  %570 = vperm.xlu1 %3360, %v396_v51   ;;  %v437_v30 = vld [vmem:[%s4684_s5 + $0x1a0] sm:$0xff] }
  0xb8   : > { %977 = vmatprep.mubr.bf16.mxu0 %v3383_v31  ;;  %v438_v31 = vld [vmem:[%s4684_s5 + $0x1a8] sm:$0xff] }
  0xba   : > { %655 = vperm.xlu0 %3359, %v413_v52  }
  0xbb   : > { %660 = vperm.xlu1 %3360, %v414_v53  }
  0xbe   : > { %575 = vperm.xlu0 %3359, %v397_v56  }
  0xbf   : > { %978 = vmatmul.mubr.bf16.gmra.mrb[8].mxu0 %v3385_v36  ;;  %580 = vperm.xlu1 %3360, %v398_v57   ;;  %v441_v36 = vld [vmem:[%s4684_s5 + $0x1c0] sm:$0xff] }
  0xc0   : > { %985 = vmatprep.mubr.bf16.mxu0 %v3386_v37  ;;  %v442_v37 = vld [vmem:[%s4684_s5 + $0x1c8] sm:$0xff] }
  0xc2   : > { %665 = vperm.xlu0 %3359, %v415_v58  }
  0xc3   : > { %670 = vperm.xlu1 %3360, %v416_v59  }
  0xc6   : > { %585 = vperm.xlu0 %3359, %v399_v62  }
  0xc7   : > { %986 = vmatmul.mubr.bf16.gmra.mrb[12].mxu0 %v3388_v42  ;;  %590 = vperm.xlu1 %3360, %v400_v63   ;;  %v445_v42 = vld [vmem:[%s4684_s5 + $0x1e0] sm:$0xff] }
  0xc8   : > { %993 = vmatprep.mubr.bf16.mxu0 %v3389_v43  ;;  %v446_v43 = vld [vmem:[%s4684_s5 + $0x1e8] sm:$0xff] }
  0xca   : > { %1156 = vperm.xlu0 %3359, %v417_v0  }
  0xcb   : > { %1161 = vperm.xlu1 %3360, %v418_v1  }
  0xce   : > { %1166 = vperm.xlu0 %3359, %v419_v4  }
  0xcf   : > { %994 = vmatmul.mubr.bf16.gmra.mrb[16].mxu0 %v3391_v48  ;;  %1171 = vperm.xlu1 %3360, %v420_v5   ;;  %v4166_v48 = vld [vmem:[#allocation3 + $0xf0] ss:$8 sps:$4 sm:$0xff]   ;;  %v3427_v5 = vld [vmem:[#allocation6 + $0x4] ss:$8 sps:$4 sm:$0xff]  }
  0xd0   : > { %1001 = vmatprep.mubr.bf16.mxu0 %v3392_v49  ;;  %1346 = vmatprep.mubr.bf16.mxu1 %v3427_v5 }
  0xd2   : > { %1176 = vperm.xlu0 %3359, %v421_v6  }
  0xd3   : > { %1181 = vperm.xlu1 %3360, %v422_v7  }
  0xd6   : > { %1186 = vperm.xlu0 %3359, %v423_v10  }
  0xd7   : > { %1002 = vmatmul.mubr.bf16.gmra.mrb[20].mxu0 %v3394_v54  ;;  %1191 = vperm.xlu1 %3360, %v424_v11  }
  0xd8   : > { %1009 = vmatprep.mubr.bf16.mxu0 %v3395_v55 }
  0xda   : > { %1196 = vperm.xlu0 %3359, %v425_v12  }
  0xdb   : > { %1201 = vperm.xlu1 %3360, %v426_v13  }
  0xde   : > { %1206 = vperm.xlu0 %3359, %v427_v16  }
  0xdf   : > { %1010 = vmatmul.mubr.bf16.gmra.mrb[24].mxu0 %v3397_v60  ;;  %1211 = vperm.xlu1 %3360, %v428_v17  }
  0xe0   : > { %1017 = vmatprep.mubr.bf16.mxu0 %v3398_v61 }
  0xe2   : > { %1216 = vperm.xlu0 %3359, %v429_v18  }
  0xe3   : > { %1221 = vperm.xlu1 %3360, %v430_v19  }
  0xe6   : > { %1226 = vperm.xlu0 %3359, %v431_v22  }
  0xe7   : > { %1018 = vmatmul.mubr.bf16.gmra.mrb[28].mxu0 %v3400_v2  ;;  %1231 = vperm.xlu1 %3360, %v432_v23  }
  0xe8   : > { %1025 = vmatprep.mubr.bf16.mxu0 %v3401_v3 }
  0xea   : > { %1453 = vperm.xlu0 %3359, %v433_v24  }
  0xeb   : > { %1458 = vperm.xlu1 %3360, %v434_v25  }
  0xee   : > { %1463 = vperm.xlu0 %3359, %v435_v28  }
  0xef   : > { %1026 = vmatmul.mubr.bf16.gmra.mrb[32].mxu0 %v3403_v8  ;;  %1468 = vperm.xlu1 %3360, %v436_v29  }
  0xf0   : > { %1033 = vmatprep.mubr.bf16.mxu0 %v3404_v9 }
  0xf2   : > { %1473 = vperm.xlu0 %3359, %v437_v30  }
  0xf3   : > { %1478 = vperm.xlu1 %3360, %v438_v31  }
  0xf6   : > { %1483 = vperm.xlu0 %3359, %v439_v34  }
  0xf7   : > { %1034 = vmatmul.mubr.bf16.gmra.mrb[36].mxu0 %v3406_v14  ;;  %1488 = vperm.xlu1 %3360, %v440_v35  }
  0xf8   : > { %1041 = vmatprep.mubr.bf16.mxu0 %v3407_v15 }
  0xfa   : > { %1493 = vperm.xlu0 %3359, %v441_v36  }
  0xfb   : > { %1498 = vperm.xlu1 %3360, %v442_v37  }
  0xfe   : > { %1503 = vperm.xlu0 %3359, %v443_v40  }
  0xff   : > { %1042 = vmatmul.mubr.bf16.gmra.mrb[40].mxu0 %v4082_v20  ;;  %1508 = vperm.xlu1 %3360, %v444_v41  }
 0x100   : > { %1049 = vmatprep.mubr.bf16.mxu0 %v4084_v21 }
 0x102   : > { %1513 = vperm.xlu0 %3359, %v445_v42  }
 0x103   : > { %1518 = vperm.xlu1 %3360, %v446_v43  }
 0x106   : > { %1523 = vperm.xlu0 %3359, %v447_v46  }
 0x107   : > { %1050 = vmatmul.mubr.bf16.gmra.mrb[44].mxu0 %v4100_v26  ;;  %1528 = vperm.xlu1 %3360, %v448_v47  }
 0x108   : > { %1057 = vmatprep.mubr.bf16.mxu0 %v4102_v27 }
 0x109   : > { %v4169_v49 = vpop.permute.xlu0 %595 }
 0x10a   : > { %v4171_v50 = vpop.permute.xlu1 %515 }
 0x10d   : > { %v4173_v51 = vpop.permute.xlu0 %600 }
 0x10e   : > { %v4175_v52 = vpop.permute.xlu1 %520 }
 0x10f   : > { %1058 = vmatmul.mubr.bf16.gmra.mrb[48].mxu0 %v4118_v32 }
 0x110   : > { %1065 = vmatprep.mubr.bf16.mxu0 %v4120_v33 }
 0x111   : > { %v4177_v53 = vpop.permute.xlu0 %605 }
 0x112   : > { %v4179_v54 = vpop.permute.xlu1 %610 }
 0x115   : > { %v4181_v55 = vpop.permute.xlu0 %525 }
 0x116   : > { %v4183_v56 = vpop.permute.xlu1 %530 }
 0x117   : > { %1066 = vmatmul.mubr.bf16.gmra.mrb[52].mxu0 %v4136_v38 }
 0x118   : > { %1073 = vmatprep.mubr.bf16.mxu0 %v4138_v39 }
 0x119   : > { %v4185_v57 = vpop.permute.xlu0 %615 }
 0x11a   : > { %v4187_v58 = vpop.permute.xlu1 %620 }
 0x11d   : > { %v4189_v59 = vpop.permute.xlu0 %535 }
 0x11e   : > { %v4191_v61 = vpop.permute.xlu1 %540 }
 0x11f   : > { %1074 = vmatmul.mubr.bf16.gmra.mrb[56].mxu0 %v4154_v44 }
 0x120   : > { %1081 = vmatprep.mubr.bf16.mxu0 %v4156_v45 }
 0x121   : > { %v4194_v4 = vpop.permute.xlu0 %625 }
 0x122   : > { %v4197_v7 = vpop.permute.xlu1 %630 }
 0x125   : > { %v4201_v15 = vpop.permute.xlu0 %545 }
 0x126   : > { %v4204_v19 = vpop.permute.xlu1 %550 }
 0x127   : > { %1082 = vmatmul.mubr.bf16.gmra.mrb[60].mxu0 %v4166_v48 }
 0x128   : > { %2061 = vmatprep.mubr.bf16.mxu0 %v3427_v5 }
 0x129   : > { %v4207_v28 = vpop.permute.xlu0 %635 }
 0x12a   : > { %v4211_v35 = vpop.permute.xlu1 %640 }
 0x12d   : > { %v4215_v42 = vpop.permute.xlu0 %555 }
 0x182   : > { %v2825_v60 = vpop.f32.mrb[0].mxu0 }
 0x183   : > { %v2826_v62 = vpop.f32.mrb[1].mxu0 }
 0x184   : > { %v2827_v63 = vadd.f32 %v2826_v62, %v2825_v60  ;;  %v2828_v0 = vpop.f32.mrb[2].mxu0  ;;  %v4217_v60 = vpop.permute.xlu1 %560 }
 0x185   : > { %v2829_v1 = vpop.f32.mrb[3].mxu0 }
 0x186   : > { %v964_v2 = vadd.f32 %v2827_v63, %v4171_v50  ;;  %v2830_v3 = vadd.f32 %v2829_v1, %v2828_v0 }
 0x188   : > { %v967_v6 = vadd.f32 %v2830_v3, %v4175_v52  ;;  %v1090_v8 = vmax.f32 %v964_v2, 0.0 }
 0x18a   : > { %v1091_v9 = vmax.f32 %v967_v6, 0.0  ;;  %v2831_v10 = vpop.f32.mrb[4].mxu0  ;;  %v4222_v6 = vpop.permute.xlu0 %645 }
 0x18b   : > { %v2832_v11 = vpop.f32.mrb[5].mxu0 }
 0x18c   : > { %v2833_v12 = vadd.f32 %v2832_v11, %v2831_v10  ;;  %v2834_v13 = vpop.f32.mrb[6].mxu0  ;;  %v4199_v14 = vpack.c.bf16 %v1091_v9, %v1090_v8  ;;  %v4225_v9 = vpop.permute.xlu1 %650 }
 0x18d   : > { %v2835_v16 = vpop.f32.mrb[7].mxu0 }
 0x18e   : > { %v972_v17 = vadd.f32 %v2833_v12, %v4181_v55  ;;  %v2836_v18 = vadd.f32 %v2835_v16, %v2834_v13 }
 0x190   : > { %v975_v22 = vadd.f32 %v2836_v18, %v4183_v56  ;;  %v1092_v23 = vmax.f32 %v972_v17, 0.0 }
 0x192   : > { %v1093_v24 = vmax.f32 %v975_v22, 0.0  ;;  %v2837_v25 = vpop.f32.mrb[8].mxu0  ;;  %v4229_v22 = vpop.permute.xlu0 %565 }
 0x193   : > { %v2838_v29 = vpop.f32.mrb[9].mxu0  ;;  %4756 = vst [vmem:[#allocation20_spill] sm:$0xff] %v4229_v22 }
 0x194   : > { %v2839_v30 = vadd.f32 %v2838_v29, %v2837_v25  ;;  %v2840_v31 = vpop.f32.mrb[10].mxu0  ;;  %v4209_v34 = vpack.c.bf16 %v1093_v24, %v1092_v23  ;;  %v4232_v29 = vpop.permute.xlu1 %570 }
 0x195   : > { %v2841_v36 = vpop.f32.mrb[11].mxu0  ;;  %4757 = vst [vmem:[#allocation21_spill] sm:$0xff] %v4232_v29 }
 0x196   : > { %v980_v37 = vadd.f32 %v2839_v30, %v4189_v59  ;;  %v2842_v40 = vadd.f32 %v2841_v36, %v2840_v31 }
 0x198   : > { %v983_v41 = vadd.f32 %v2842_v40, %v4191_v61  ;;  %v1094_v43 = vmax.f32 %v980_v37, 0.0  ;;  %v4235_v40 = vpop.permute.xlu0 %655 }
 0x19a   : > { %v1095_v46 = vmax.f32 %v983_v41, 0.0  ;;  %v2843_v47 = vpop.f32.mrb[12].mxu0 }
 0x19b   : > { %v2844_v62 = vpop.f32.mrb[13].mxu0 }
 0x19c   : > { %v2845_v63 = vadd.f32 %v2844_v62, %v2843_v47  ;;  %v2846_v0 = vpop.f32.mrb[14].mxu0  ;;  %v4219_v1 = vpack.c.bf16 %v1095_v46, %v1094_v43  ;;  %v4239_v62 = vpop.permute.xlu1 %660 }
 0x19d   : > { %v2847_v2 = vpop.f32.mrb[15].mxu0 }
 0x19e   : > { %v988_v3 = vadd.f32 %v2845_v63, %v4201_v15  ;;  %v2848_v5 = vadd.f32 %v2847_v2, %v2846_v0 }
 0x1a0   : > { %v991_v8 = vadd.f32 %v2848_v5, %v4204_v19  ;;  %v1096_v10 = vmax.f32 %v988_v3, 0.0  ;;  %v4243_v5 = vpop.permute.xlu0 %575 }
 0x1a1   : > { %4758 = vst [vmem:[#allocation22_spill] sm:$0xff] %v4243_v5 }
 0x1a2   : > { %v1097_v11 = vmax.f32 %v991_v8, 0.0  ;;  %v2849_v12 = vpop.f32.mrb[16].mxu0 }
 0x1a3   : > { %v2850_v13 = vpop.f32.mrb[17].mxu0 }
 0x1a4   : > { %v2851_v16 = vadd.f32 %v2850_v13, %v2849_v12  ;;  %v2852_v17 = vpop.f32.mrb[18].mxu0  ;;  %v4227_v18 = vpack.c.bf16 %v1097_v11, %v1096_v10  ;;  %v4245_v12 = vpop.permute.xlu1 %580 }
 0x1a5   : > { %v2853_v23 = vpop.f32.mrb[19].mxu0  ;;  %4759 = vst [vmem:[#allocation23_spill] sm:$0xff] %v4245_v12 }
 0x1a6   : > { %v996_v24 = vadd.f32 %v2851_v16, %v4215_v42  ;;  %v2854_v25 = vadd.f32 %v2853_v23, %v2852_v17 }
 0x1a8   : > { %v999_v30 = vadd.f32 %v2854_v25, %v4217_v60  ;;  %v1098_v31 = vmax.f32 %v996_v24, 0.0 }
 0x1aa   : > { %v1099_v36 = vmax.f32 %v999_v30, 0.0  ;;  %v2855_v37 = vpop.f32.mrb[20].mxu0 }
 0x1ab   : > { %v2856_v41 = vpop.f32.mrb[21].mxu0 }
 0x1ac   : > { %v2857_v43 = vadd.f32 %v2856_v41, %v2855_v37  ;;  %v2858_v46 = vpop.f32.mrb[22].mxu0  ;;  %v4237_v47 = vpack.c.bf16 %v1099_v36, %v1098_v31  ;;  %v4250_v31 = vpop.permute.xlu0 %665 }
 0x1ad   : > { %v2859_v63 = vpop.f32.mrb[23].mxu0  ;;  %v4253_v37 = vpop.permute.xlu1 %670 }
 0x1ae   : > { %v1004_v0 = vadd.f32 %v2857_v43, %v4229_v22  ;;  %v2860_v2 = vadd.f32 %v2859_v63, %v2858_v46 }
 0x1b0   : > { %v1007_v3 = vadd.f32 %v2860_v2, %v4232_v29  ;;  %v1100_v8 = vmax.f32 %v1004_v0, 0.0 }
 0x1b2   : > { %v1101_v10 = vmax.f32 %v1007_v3, 0.0  ;;  %v2861_v11 = vpop.f32.mrb[24].mxu0 }
 0x1b3   : > { %v2862_v13 = vpop.f32.mrb[25].mxu0 }
 0x1b4   : > { %v2863_v16 = vadd.f32 %v2862_v13, %v2861_v11  ;;  %v2864_v17 = vpop.f32.mrb[26].mxu0  ;;  %v4247_v23 = vpack.c.bf16 %v1101_v10, %v1100_v8  ;;  %v4257_v8 = vpop.permute.xlu0 %585 }
 0x1b5   : > { %v2865_v24 = vpop.f32.mrb[27].mxu0  ;;  %4760 = vst [vmem:[#allocation24_spill] sm:$0xff] %v4257_v8 }
 0x1b6   : > { %v1012_v25 = vadd.f32 %v2863_v16, %v4243_v5  ;;  %v2866_v30 = vadd.f32 %v2865_v24, %v2864_v17  ;;  %v4260_v16 = vpop.permute.xlu1 %590 }
 0x1b7   : > { %4761 = vst [vmem:[#allocation25_spill] sm:$0xff] %v4260_v16 }
 0x1b8   : > { %v1015_v36 = vadd.f32 %v2866_v30, %v4245_v12  ;;  %v1102_v41 = vmax.f32 %v1012_v25, 0.0 }
 0x1ba   : > { %v1103_v43 = vmax.f32 %v1015_v36, 0.0  ;;  %v2867_v46 = vpop.f32.mrb[28].mxu0 }
 0x1bb   : > { %v2868_v63 = vpop.f32.mrb[29].mxu0 }
 0x1bc   : > { %v2869_v0 = vadd.f32 %v2868_v63, %v2867_v46  ;;  %v2870_v2 = vpop.f32.mrb[30].mxu0  ;;  %v4255_v3 = vpack.c.bf16 %v1103_v43, %v1102_v41 }
 0x1bd   : > { %v2871_v10 = vpop.f32.mrb[31].mxu0 }
 0x1be   : > { %v1020_v11 = vadd.f32 %v2869_v0, %v4257_v8  ;;  %v2872_v13 = vadd.f32 %v2871_v10, %v2870_v2 }
 0x1c0   : > { %v1023_v17 = vadd.f32 %v2872_v13, %v4260_v16  ;;  %v1104_v24 = vmax.f32 %v1020_v11, 0.0 }
 0x1c2   : > { %v1105_v30 = vmax.f32 %v1023_v17, 0.0  ;;  %v2873_v25 = vpop.f32.mrb[32].mxu0 }
 0x1c3   : > { %v2874_v36 = vpop.f32.mrb[33].mxu0 }
 0x1c4   : > { %v2875_v12 = vadd.f32 %v2874_v36, %v2873_v25  ;;  %v2876_v5 = vpop.f32.mrb[34].mxu0  ;;  %v4263_v46 = vpack.c.bf16 %v1105_v30, %v1104_v24 }
 0x1c5   : > { %v2877_v41 = vpop.f32.mrb[35].mxu0 }
 0x1c6   : > { %v2878_v43 = vadd.f32 %v2877_v41, %v2876_v5  ;;  %v1028_v63 = vadd.f32 %v2875_v12, %v4169_v49 }
 0x1c8   : > { %v1031_v29 = vadd.f32 %v2878_v43, %v4173_v51  ;;  %v1106_v2 = vmax.f32 %v1028_v63, 0.0 }
 0x1ca   : > { %v2879_v0 = vpop.f32.mrb[36].mxu0  ;;  %v1107_v10 = vmax.f32 %v1031_v29, 0.0 }
 0x1cb   : > { %v2880_v8 = vpop.f32.mrb[37].mxu0 }
 0x1cc   : > { %v2881_v22 = vadd.f32 %v2880_v8, %v2879_v0  ;;  %v2882_v13 = vpop.f32.mrb[38].mxu0  ;;  %v1130_v11 = vpack.c.bf16 %v1107_v10, %v1106_v2 }
 0x1cd   : > { %v2883_v17 = vpop.f32.mrb[39].mxu0 }
 0x1ce   : > { %v1036_v16 = vadd.f32 %v2881_v22, %v4177_v53  ;;  %v2884_v25 = vadd.f32 %v2883_v17, %v2882_v13  ;;  %2921 = vmatprep.subr.bf16.mxu1 %v1130_v11 }
 0x1cf   : > { %2922 = vmatpush3.bf16.msra.mxu1 %v4199_v14 }
 0x1d0   : > { %v1039_v5 = vadd.f32 %v2884_v25, %v4179_v54  ;;  %v1108_v24 = vmax.f32 %v1036_v16, 0.0 }
 0x1d2   : > { %v1109_v12 = vmax.f32 %v1039_v5, 0.0  ;;  %v2885_v30 = vpop.f32.mrb[40].mxu0 }
 0x1d3   : > { %v2886_v36 = vpop.f32.mrb[41].mxu0 }
 0x1d4   : > { %v2887_v41 = vadd.f32 %v2886_v36, %v2885_v30  ;;  %v2888_v43 = vpop.f32.mrb[42].mxu0  ;;  %v1131_v29 = vpack.c.bf16 %v1109_v12, %v1108_v24 }
 0x1d5   : > { %v2889_v63 = vpop.f32.mrb[43].mxu0 }
 0x1d6   : > { %v1044_v8 = vadd.f32 %v2887_v41, %v4185_v57  ;;  %v2890_v0 = vadd.f32 %v2889_v63, %v2888_v43  ;;  %2923 = vmatprep.subr.bf16.mxu1 %v1131_v29 }
 0x1d7   : > { %2924 = vmatpush3.bf16.msra.mxu1 %v4209_v34 }
 0x1d8   : > { %v1047_v22 = vadd.f32 %v2890_v0, %v4187_v58  ;;  %v1110_v2 = vmax.f32 %v1044_v8, 0.0 }
 0x1da   : > { %v1111_v14 = vmax.f32 %v1047_v22, 0.0  ;;  %v2891_v10 = vpop.f32.mrb[44].mxu0 }
 0x1db   : > { %v2892_v13 = vpop.f32.mrb[45].mxu0 }
 0x1dc   : > { %v2893_v16 = vadd.f32 %v2892_v13, %v2891_v10  ;;  %v2894_v11 = vpop.f32.mrb[46].mxu0  ;;  %v1132_v17 = vpack.c.bf16 %v1111_v14, %v1110_v2 }
 0x1dd   : > { %v2895_v25 = vpop.f32.mrb[47].mxu0 }
 0x1de   : > { %v1052_v5 = vadd.f32 %v2893_v16, %v4194_v4  ;;  %v2896_v24 = vadd.f32 %v2895_v25, %v2894_v11  ;;  %2925 = vmatprep.subr.bf16.mxu1 %v1132_v17 }
 0x1df   : > { %2926 = vmatpush3.bf16.msra.mxu1 %v4219_v1 }
 0x1e0   : > { %v1055_v12 = vadd.f32 %v2896_v24, %v4197_v7  ;;  %v1112_v30 = vmax.f32 %v1052_v5, 0.0 }
 0x1e2   : > { %v1113_v34 = vmax.f32 %v1055_v12, 0.0  ;;  %v2897_v36 = vpop.f32.mrb[48].mxu0 }
 0x1e3   : > { %v2898_v41 = vpop.f32.mrb[49].mxu0 }
 0x1e4   : > { %v2899_v43 = vadd.f32 %v2898_v41, %v2897_v36  ;;  %v2900_v29 = vpop.f32.mrb[50].mxu0  ;;  %v1133_v63 = vpack.c.bf16 %v1113_v34, %v1112_v30 }
 0x1e5   : > { %v2901_v8 = vpop.f32.mrb[51].mxu0 }
 0x1e6   : > { %v1060_v0 = vadd.f32 %v2899_v43, %v4207_v28  ;;  %v2902_v22 = vadd.f32 %v2901_v8, %v2900_v29  ;;  %2927 = vmatprep.subr.bf16.mxu1 %v1133_v63 }
 0x1e7   : > { %2928 = vmatpush3.bf16.msra.mxu1 %v4227_v18 }
 0x1e8   : > { %v1063_v2 = vadd.f32 %v2902_v22, %v4211_v35  ;;  %v1114_v14 = vmax.f32 %v1060_v0, 0.0 }
 0x1ea   : > { %v1115_v1 = vmax.f32 %v1063_v2, 0.0  ;;  %v2903_v10 = vpop.f32.mrb[52].mxu0 }
 0x1eb   : > { %v2904_v13 = vpop.f32.mrb[53].mxu0 }
 0x1ec   : > { %v2905_v16 = vadd.f32 %v2904_v13, %v2903_v10  ;;  %v2906_v11 = vpop.f32.mrb[54].mxu0  ;;  %v1134_v17 = vpack.c.bf16 %v1115_v1, %v1114_v14 }
 0x1ed   : > { %v2907_v25 = vpop.f32.mrb[55].mxu0 }
 0x1ee   : > { %v1068_v5 = vadd.f32 %v2905_v16, %v4222_v6  ;;  %v2908_v24 = vadd.f32 %v2907_v25, %v2906_v11  ;;  %2929 = vmatprep.subr.bf16.mxu1 %v1134_v17 }
 0x1ef   : > { %2930 = vmatpush3.bf16.msra.mxu1 %v4237_v47 }
 0x1f0   : > { %v1071_v12 = vadd.f32 %v2908_v24, %v4225_v9  ;;  %v1116_v30 = vmax.f32 %v1068_v5, 0.0 }
 0x1f2   : > { %v1117_v18 = vmax.f32 %v1071_v12, 0.0  ;;  %v2909_v34 = vpop.f32.mrb[56].mxu0 }
 0x1f3   : > { %v2910_v36 = vpop.f32.mrb[57].mxu0 }
 0x1f4   : > { %v2911_v41 = vadd.f32 %v2910_v36, %v2909_v34  ;;  %v2912_v43 = vpop.f32.mrb[58].mxu0  ;;  %v1135_v29 = vpack.c.bf16 %v1117_v18, %v1116_v30  ;;  %v4288_v30 = vld [vmem:[#allocation6] ss:$8 sps:$4 sm:$0xff]   ;;  %v4291_v18 = vld [vmem:[#allocation6 + $0x14] ss:$8 sps:$4 sm:$0xff]  }
 0x1f5   : > { %v2913_v63 = vpop.f32.mrb[59].mxu0  ;;  %v4295_v34 = vld [vmem:[#allocation6 + $0x10] ss:$8 sps:$4 sm:$0xff]   ;;  %v4297_v36 = vld [vmem:[#allocation6 + $0x24] ss:$8 sps:$4 sm:$0xff]  }
 0x1f6   : > { %v1076_v8 = vadd.f32 %v2911_v41, %v4235_v40  ;;  %v2914_v0 = vadd.f32 %v2913_v63, %v2912_v43  ;;  %2931 = vmatprep.subr.bf16.mxu1 %v1135_v29  ;;  %v4303_v41 = vld [vmem:[#allocation6 + $0x34] ss:$8 sps:$4 sm:$0xff]   ;;  %v4309_v43 = vld [vmem:[#allocation6 + $0x44] ss:$8 sps:$4 sm:$0xff]   ;;  %v4313_v29 = vld [vmem:[#allocation6 + $0x40] ss:$8 sps:$4 sm:$0xff]  }
 0x1f7   : > { %2932 = vmatpush3.bf16.msra.mxu1 %v4247_v23  ;;  %4762 = vst [vmem:[#allocation26_spill] sm:$0xff] %v4313_v29  ;;  %v4315_v63 = vld [vmem:[#allocation6 + $0x54] ss:$8 sps:$4 sm:$0xff]  }
 0x1f8   : > { %v1079_v22 = vadd.f32 %v2914_v0, %v4239_v62  ;;  %v1118_v2 = vmax.f32 %v1076_v8, 0.0  ;;  %4763 = vst [vmem:[#allocation27_spill] sm:$0xff] %v4315_v63  ;;  %v4319_v8 = vld [vmem:[#allocation6 + $0x50] ss:$8 sps:$4 sm:$0xff]   ;;  %v4321_v0 = vld [vmem:[#allocation6 + $0x64] ss:$8 sps:$4 sm:$0xff]  }
 0x1f9   : > { %4764 = vst [vmem:[#allocation28_spill] sm:$0xff] %v4319_v8  ;;  %4765 = vst [vmem:[#allocation29_spill] sm:$0xff] %v4321_v0 }
 0x1fa   : > { %v1119_v47 = vmax.f32 %v1079_v22, 0.0  ;;  %v2915_v14 = vpop.f32.mrb[60].mxu0  ;;  %v4325_v22 = vld [vmem:[#allocation6 + $0x60] ss:$8 sps:$4 sm:$0xff]  }
 0x1fb   : > { %v2916_v1 = vpop.f32.mrb[61].mxu0  ;;  %4766 = vst [vmem:[#allocation30_spill] sm:$0xff] %v4325_v22 }
 0x1fc   : > { %v2917_v10 = vadd.f32 %v2916_v1, %v2915_v14  ;;  %v2918_v13 = vpop.f32.mrb[62].mxu0  ;;  %v1136_v16 = vpack.c.bf16 %v1119_v47, %v1118_v2  ;;  %v4327_v2 = vld [vmem:[#allocation6 + $0x74] ss:$8 sps:$4 sm:$0xff]   ;;  %v4331_v47 = vld [vmem:[#allocation6 + $0x70] ss:$8 sps:$4 sm:$0xff]   ;;  %v4334_v14 = vld [vmem:[#allocation8] sm:$0xff]  }
 0x1fd   : > { %v2919_v11 = vpop.f32.mrb[63].mxu0  ;;  %4767 = vst [vmem:[#allocation31_spill] sm:$0xff] %v4327_v2  ;;  %4768 = vst [vmem:[#allocation32_spill] sm:$0xff] %v4331_v47 }
 0x1fe   : > { %v1084_v17 = vadd.f32 %v2917_v10, %v4250_v31  ;;  %v2920_v25 = vadd.f32 %v2919_v11, %v2918_v13  ;;  %2933 = vmatprep.subr.bf16.mxu1 %v1136_v16  ;;  %4769 = vst [vmem:[#allocation33_spill] sm:$0xff] %v4334_v14  ;;  %v4337_v11 = vpop.permute.xlu0 %1156 }
 0x1ff   : > { %2934 = vmatpush3.bf16.msra.mxu1 %v4255_v3  ;;  %v4301_v3 = vld [vmem:[#allocation6 + $0x20] ss:$8 sps:$4 sm:$0xff]   ;;  %4770 = vst [vmem:[#allocation34_spill] sm:$0xff] %v4337_v11 }
 0x200   : > { %v1087_v5 = vadd.f32 %v2920_v25, %v4253_v37  ;;  %v1120_v24 = vmax.f32 %v1084_v17, 0.0 }
 0x202   : > { %v1121_v23 = vmax.f32 %v1087_v5, 0.0 }
 0x204   : > { %v1137_v12 = vpack.c.bf16 %v1121_v23, %v1120_v24  ;;  %v4340_v24 = vpop.permute.xlu1 %1161 }
 0x205   : > { %4771 = vst [vmem:[#allocation35_spill] sm:$0xff] %v4340_v24 }
 0x206   : > { %2935 = vmatprep.subr.bf16.mxu1 %v1137_v12 }
 0x207   : > { %2936 = vmatpush3.bf16.msra.mxu1 %v4263_v46  ;;  %v4307_v46 = vld [vmem:[#allocation6 + $0x30] ss:$8 sps:$4 sm:$0xff]  }
 0x20a   : > { %1347 = vmatmul.mubr.bf16.vlgmr.msra.gmra.mrb[0].mxu1 %v4288_v30 }
 0x20b   : > { %1354 = vmatprep.mubr.bf16.mxu1 %v4291_v18 }
 0x212   : > { %1355 = vmatmul.mubr.bf16.gmra.mrb[4].mxu1 %v4295_v34 }
 0x213   : > { %1362 = vmatprep.mubr.bf16.mxu1 %v4297_v36 }
 0x21a   : > { %1363 = vmatmul.mubr.bf16.gmra.mrb[8].mxu1 %v4301_v3 }
 0x21b   : > { %1370 = vmatprep.mubr.bf16.mxu1 %v4303_v41 }
 0x222   : > { %1371 = vmatmul.mubr.bf16.gmra.mrb[12].mxu1 %v4307_v46 }
 0x223   : > { %1378 = vmatprep.mubr.bf16.mxu1 %v4309_v43 }
 0x22a   : > { %1379 = vmatmul.mubr.bf16.gmra.mrb[16].mxu1 %v4313_v29 }
 0x22b   : > { %1386 = vmatprep.mubr.bf16.mxu1 %v4315_v63  ;;  %v4343_v63 = vpop.permute.xlu0 %1166 }
 0x22c   : > { %4772 = vst [vmem:[#allocation36_spill] sm:$0xff] %v4343_v63 }
 0x232   : > { %1387 = vmatmul.mubr.bf16.gmra.mrb[20].mxu1 %v4319_v8 }
 0x233   : > { %1394 = vmatprep.mubr.bf16.mxu1 %v4321_v0 }
 0x23a   : > { %1395 = vmatmul.mubr.bf16.gmra.mrb[24].mxu1 %v4325_v22 }
 0x23b   : > { %1402 = vmatprep.mubr.bf16.mxu1 %v4327_v2 }
 0x242   : > { %1403 = vmatmul.mubr.bf16.gmra.mrb[28].mxu1 %v4331_v47 }
 0x243   : > { %3209 = vmatprep.mubr.bf16.mxu1 %v4334_v14 }
 0x2dd   : > { %v2937_v1 = vpop.f32.mrb[0].mxu1 }
 0x2de   : > { %v2938_v10 = vpop.f32.mrb[1].mxu1 }
 0x2df   : > { %v2939_v13 = vadd.f32 %v2938_v10, %v2937_v1  ;;  %v2940_v16 = vpop.f32.mrb[2].mxu1 }
 0x2e0   : > { %v2941_v17 = vpop.f32.mrb[3].mxu1 }
 0x2e1   : > { %v1349_v25 = vadd.f32 %v2939_v13, %v4337_v11  ;;  %v2942_v5 = vadd.f32 %v2941_v17, %v2940_v16  ;;  %v4346_v13 = vpop.permute.xlu1 %1171 }
 0x2e2   : > { %4773 = vst [vmem:[#allocation37_spill] sm:$0xff] %v4346_v13 }
 0x2e3   : > { %v1352_v23 = vadd.f32 %v2942_v5, %v4340_v24  ;;  %v1411_v12 = vmax.f32 %v1349_v25, 0.0 }
 0x2e5   : > { %v1412_v47 = vmax.f32 %v1352_v23, 0.0  ;;  %v2943_v2 = vpop.f32.mrb[4].mxu1 }
 0x2e6   : > { %v2944_v22 = vpop.f32.mrb[5].mxu1 }
 0x2e7   : > { %v2945_v0 = vadd.f32 %v2944_v22, %v2943_v2  ;;  %v2946_v14 = vpop.f32.mrb[6].mxu1  ;;  %v1427_v8 = vpack.c.bf16 %v1412_v47, %v1411_v12  ;;  %v4349_v47 = vpop.permute.xlu0 %1176 }
 0x2e8   : > { %v2947_v1 = vpop.f32.mrb[7].mxu1  ;;  %4774 = vst [vmem:[#allocation38_spill] sm:$0xff] %v4349_v47 }
 0x2e9   : > { %v1357_v10 = vadd.f32 %v2945_v0, %v4343_v63  ;;  %v2948_v29 = vadd.f32 %v2947_v1, %v2946_v14  ;;  %3193 = vmatprep.subr.bf16.mxu1 %v1427_v8  ;;  %v4352_v14 = vpop.permute.xlu1 %1181 }
 0x2ea   : > { %3194 = vmatpush3.bf16.msra.mxu1 %v1427_v8  ;;  %4775 = vst [vmem:[#allocation39_spill] sm:$0xff] %v4352_v14 }
 0x2eb   : > { %v1360_v16 = vadd.f32 %v2948_v29, %v4346_v13  ;;  %v1413_v17 = vmax.f32 %v1357_v10, 0.0 }
 0x2ed   : > { %v1414_v25 = vmax.f32 %v1360_v16, 0.0  ;;  %v2949_v5 = vpop.f32.mrb[8].mxu1 }
 0x2ee   : > { %v2950_v23 = vpop.f32.mrb[9].mxu1 }
 0x2ef   : > { %v2951_v24 = vadd.f32 %v2950_v23, %v2949_v5  ;;  %v2952_v22 = vpop.f32.mrb[10].mxu1  ;;  %v1428_v2 = vpack.c.bf16 %v1414_v25, %v1413_v17  ;;  %v4355_v17 = vpop.permute.xlu0 %1186 }
 0x2f0   : > { %v2953_v12 = vpop.f32.mrb[11].mxu1  ;;  %4776 = vst [vmem:[#allocation40_spill] sm:$0xff] %v4355_v17 }
 0x2f1   : > { %v1365_v11 = vadd.f32 %v2951_v24, %v4349_v47  ;;  %v2954_v0 = vadd.f32 %v2953_v12, %v2952_v22  ;;  %3195 = vmatprep.subr.bf16.mxu1 %v1428_v2  ;;  %v4358_v22 = vpop.permute.xlu1 %1191 }
 0x2f2   : > { %3196 = vmatpush3.bf16.msra.mxu1 %v1428_v2  ;;  %4777 = vst [vmem:[#allocation41_spill] sm:$0xff] %v4358_v22 }
 0x2f3   : > { %v1368_v8 = vadd.f32 %v2954_v0, %v4352_v14  ;;  %v1415_v29 = vmax.f32 %v1365_v11, 0.0 }
 0x2f5   : > { %v1416_v1 = vmax.f32 %v1368_v8, 0.0  ;;  %v2955_v10 = vpop.f32.mrb[12].mxu1 }
 0x2f6   : > { %v2956_v16 = vpop.f32.mrb[13].mxu1 }
 0x2f7   : > { %v2957_v13 = vadd.f32 %v2956_v16, %v2955_v10  ;;  %v2958_v5 = vpop.f32.mrb[14].mxu1  ;;  %v1429_v23 = vpack.c.bf16 %v1416_v1, %v1415_v29  ;;  %v4361_v29 = vpop.permute.xlu0 %1196 }
 0x2f8   : > { %v2959_v25 = vpop.f32.mrb[15].mxu1  ;;  %4778 = vst [vmem:[#allocation42_spill] sm:$0xff] %v4361_v29 }
 0x2f9   : > { %v1373_v63 = vadd.f32 %v2957_v13, %v4355_v17  ;;  %v2960_v24 = vadd.f32 %v2959_v25, %v2958_v5  ;;  %3197 = vmatprep.subr.bf16.mxu1 %v1429_v23  ;;  %v4364_v5 = vpop.permute.xlu1 %1201 }
 0x2fa   : > { %3198 = vmatpush3.bf16.msra.mxu1 %v1429_v23  ;;  %4779 = vst [vmem:[#allocation43_spill] sm:$0xff] %v4364_v5 }
 0x2fb   : > { %v1376_v2 = vadd.f32 %v2960_v24, %v4358_v22  ;;  %v1417_v12 = vmax.f32 %v1373_v63, 0.0 }
 0x2fd   : > { %v1418_v11 = vmax.f32 %v1376_v2, 0.0  ;;  %v2961_v0 = vpop.f32.mrb[16].mxu1 }
 0x2fe   : > { %v2962_v8 = vpop.f32.mrb[17].mxu1 }
 0x2ff   : > { %v2963_v14 = vadd.f32 %v2962_v8, %v2961_v0  ;;  %v2964_v10 = vpop.f32.mrb[18].mxu1  ;;  %v1430_v16 = vpack.c.bf16 %v1418_v11, %v1417_v12  ;;  %v4367_v12 = vpop.permute.xlu0 %1206 }
 0x300   : > { %v2965_v1 = vpop.f32.mrb[19].mxu1 }
 0x301   : > { %v1381_v47 = vadd.f32 %v2963_v14, %v4361_v29  ;;  %v2966_v13 = vadd.f32 %v2965_v1, %v2964_v10  ;;  %3199 = vmatprep.subr.bf16.mxu1 %v1430_v16  ;;  %v4370_v10 = vpop.permute.xlu1 %1211 }
 0x302   : > { %3200 = vmatpush3.bf16.msra.mxu1 %v1430_v16  ;;  %4780 = vst [vmem:[#allocation44_spill] sm:$0xff] %v4370_v10 }
 0x303   : > { %v1384_v23 = vadd.f32 %v2966_v13, %v4364_v5  ;;  %v1419_v25 = vmax.f32 %v1381_v47, 0.0 }
 0x305   : > { %v1420_v63 = vmax.f32 %v1384_v23, 0.0  ;;  %v2967_v24 = vpop.f32.mrb[20].mxu1 }
 0x306   : > { %v2968_v2 = vpop.f32.mrb[21].mxu1 }
 0x307   : > { %v2969_v22 = vadd.f32 %v2968_v2, %v2967_v24  ;;  %v2970_v0 = vpop.f32.mrb[22].mxu1  ;;  %v1431_v8 = vpack.c.bf16 %v1420_v63, %v1419_v25  ;;  %v4373_v25 = vpop.permute.xlu0 %1216 }
 0x308   : > { %v2971_v11 = vpop.f32.mrb[23].mxu1 }
 0x309   : > { %v1389_v17 = vadd.f32 %v2969_v22, %v4367_v12  ;;  %v2972_v14 = vadd.f32 %v2971_v11, %v2970_v0  ;;  %3201 = vmatprep.subr.bf16.mxu1 %v1431_v8  ;;  %v4376_v0 = vpop.permute.xlu1 %1221 }
 0x30a   : > { %3202 = vmatpush3.bf16.msra.mxu1 %v1431_v8 }
 0x30b   : > { %v1392_v16 = vadd.f32 %v2972_v14, %v4370_v10  ;;  %v1421_v1 = vmax.f32 %v1389_v17, 0.0 }
 0x30d   : > { %v1422_v47 = vmax.f32 %v1392_v16, 0.0  ;;  %v2973_v13 = vpop.f32.mrb[24].mxu1 }
 0x30e   : > { %v2974_v23 = vpop.f32.mrb[25].mxu1 }
 0x30f   : > { %v2975_v5 = vadd.f32 %v2974_v23, %v2973_v13  ;;  %v2976_v24 = vpop.f32.mrb[26].mxu1  ;;  %v1432_v2 = vpack.c.bf16 %v1422_v47, %v1421_v1  ;;  %v4379_v47 = vpop.permute.xlu0 %1226 }
 0x310   : > { %v2977_v63 = vpop.f32.mrb[27].mxu1 }
 0x311   : > { %v1397_v29 = vadd.f32 %v2975_v5, %v4373_v25  ;;  %v2978_v22 = vadd.f32 %v2977_v63, %v2976_v24  ;;  %3203 = vmatprep.subr.bf16.mxu1 %v1432_v2 }
 0x312   : > { %3204 = vmatpush3.bf16.msra.mxu1 %v1432_v2  ;;  %v4382_v2 = vpop.permute.xlu1 %1231 }
 0x313   : > { %v1400_v8 = vadd.f32 %v2978_v22, %v4376_v0  ;;  %v1423_v11 = vmax.f32 %v1397_v29, 0.0  ;;  %4781 = vst [vmem:[#allocation45_spill] sm:$0xff] %v4382_v2 }
 0x315   : > { %v1424_v17 = vmax.f32 %v1400_v8, 0.0  ;;  %v2979_v14 = vpop.f32.mrb[28].mxu1 }
 0x316   : > { %v2980_v16 = vpop.f32.mrb[29].mxu1 }
 0x317   : > { %v2981_v13 = vadd.f32 %v2980_v16, %v2979_v14  ;;  %v2982_v23 = vpop.f32.mrb[30].mxu1  ;;  %v1433_v1 = vpack.c.bf16 %v1424_v17, %v1423_v11  ;;  %v3451_v11 = vld [vmem:[%s3926_s14 + $0x84] ss:$8 sps:$4 sm:$0xff]   ;;  %v3453_v16 = vld [vmem:[%s3926_s14 + $0x94] ss:$8 sps:$4 sm:$0xff]  }
 0x318   : > { %v2983_v10 = vpop.f32.mrb[31].mxu1  ;;  %v4386_v17 = vld [vmem:[#allocation8 + $0x8] sm:$0xff]  }
 0x319   : > { %v1405_v5 = vadd.f32 %v2981_v13, %v4379_v47  ;;  %v2984_v24 = vadd.f32 %v2983_v10, %v2982_v23  ;;  %3205 = vmatprep.subr.bf16.mxu1 %v1433_v1  ;;  %4782 = vst [vmem:[#allocation46_spill] sm:$0xff] %v4386_v17  ;;  %v3452_v14 = vld [vmem:[%s3926_s14 + $0x4] ss:$8 sps:$4 sm:$0xff]   ;;  %v4389_v10 = vld [vmem:[#allocation8 + $0x10] sm:$0xff]  }
 0x31a   : > { %3206 = vmatpush3.bf16.msra.mxu1 %v1433_v1  ;;  %4783 = vst [vmem:[#allocation47_spill] sm:$0xff] %v4389_v10  ;;  %v3454_v13 = vld [vmem:[%s3926_s14 + $0x14] ss:$8 sps:$4 sm:$0xff]   ;;  %v3457_v23 = vld [vmem:[%s3926_s14 + $0xa4] ss:$8 sps:$4 sm:$0xff]  }
 0x31b   : > { %v1408_v29 = vadd.f32 %v2984_v24, %v4382_v2  ;;  %v1425_v63 = vmax.f32 %v1405_v5, 0.0  ;;  %v4396_v1 = vld [vmem:[#allocation8 + $0x18] sm:$0xff]   ;;  %v3458_v5 = vld [vmem:[%s3926_s14 + $0x24] ss:$8 sps:$4 sm:$0xff]  }
 0x31c   : > { %4784 = vst [vmem:[#allocation48_spill] sm:$0xff] %v4396_v1  ;;  %v4399_v24 = vld [vmem:[#allocation8 + $0x20] sm:$0xff]  }
 0x31d   : > { %v1426_v22 = vmax.f32 %v1408_v29, 0.0  ;;  %4785 = vst [vmem:[#allocation49_spill] sm:$0xff] %v4399_v24  ;;  %v3459_v29 = vld [vmem:[%s3926_s14 + $0xb4] ss:$8 sps:$4 sm:$0xff]  }
 0x31f   : > { %v1434_v8 = vpack.c.bf16 %v1426_v22, %v1425_v63  ;;  %v3460_v63 = vld [vmem:[%s3926_s14 + $0x34] ss:$8 sps:$4 sm:$0xff]   ;;  %v3463_v22 = vld [vmem:[%s3926_s14 + $0xc4] ss:$8 sps:$4 sm:$0xff]  }
 0x321   : > { %3207 = vmatprep.subr.bf16.mxu1 %v1434_v8 }
 0x322   : > { %3208 = vmatpush3.bf16.msra.mxu1 %v1434_v8  ;;  %v4406_v8 = vld [vmem:[#allocation8 + $0x28] sm:$0xff]  }
 0x323   : > { %3001 = vmatprep.subr.bf16.mxu1 %v3451_v11  ;;  %4786 = vst [vmem:[#allocation50_spill] sm:$0xff] %v4406_v8  ;;  %v3464_v11 = vld [vmem:[%s3926_s14 + $0x44] ss:$8 sps:$4 sm:$0xff]  }
 0x325   : > { %3210 = vmatmul.mubr.bf16.vlgmr.msra.gmra.mrb[32].mxu1 %v4386_v17 }
 0x326   : > { %3002 = vmatpush3.bf16.msra.mxu1 %v3452_v14  ;;  %3213 = vmatprep.mubr.bf16.mxu1 %v4389_v10  ;;  %v4409_v14 = vld [vmem:[#allocation8 + $0x30] sm:$0xff]  }
 0x327   : > { %3003 = vmatprep.subr.bf16.mxu1 %v3453_v16  ;;  %4787 = vst [vmem:[#allocation51_spill] sm:$0xff] %v4409_v14  ;;  %v3465_v16 = vld [vmem:[%s3926_s14 + $0xd4] ss:$8 sps:$4 sm:$0xff]  }
 0x32a   : > { %3004 = vmatpush3.bf16.msra.mxu1 %v3454_v13  ;;  %v3466_v13 = vld [vmem:[%s3926_s14 + $0x54] ss:$8 sps:$4 sm:$0xff]  }
 0x32b   : > { %3005 = vmatprep.subr.bf16.mxu1 %v3457_v23  ;;  %v3469_v23 = vld [vmem:[%s3926_s14 + $0xe4] ss:$8 sps:$4 sm:$0xff]  }
 0x32d   : > { %3214 = vmatmul.mubr.bf16.gmra.mrb[36].mxu1 %v4396_v1  ;;  %v3480_v1 = vld [vmem:[#allocation3 + $0x30] ss:$8 sps:$4 sm:$0xff]  }
 0x32e   : > { %3006 = vmatpush3.bf16.msra.mxu1 %v3458_v5  ;;  %3217 = vmatprep.mubr.bf16.mxu1 %v4399_v24  ;;  %v4416_v5 = vld [vmem:[#allocation8 + $0x38] sm:$0xff]  }
 0x32f   : > { %3007 = vmatprep.subr.bf16.mxu1 %v3459_v29  ;;  %4788 = vst [vmem:[#allocation52_spill] sm:$0xff] %v4416_v5  ;;  %v3470_v29 = vld [vmem:[%s3926_s14 + $0x64] ss:$8 sps:$4 sm:$0xff]   ;;  %v3472_v24 = vld [vmem:[%s3926_s14 + $0x74] ss:$8 sps:$4 sm:$0xff]  }
 0x332   : > { %3008 = vmatpush3.bf16.msra.mxu1 %v3460_v63  ;;  %v3471_v63 = vld [vmem:[%s3926_s14 + $0xf4] ss:$8 sps:$4 sm:$0xff]   ;;  %s351_s14 = sand.u32 1, %s3680_s25  }
 0x333   : > { %3009 = vmatprep.subr.bf16.mxu1 %v3463_v22  ;;  %v3473_v22 = vld [vmem:[#allocation3 + $0x4] ss:$8 sps:$4 sm:$0xff]   ;;  %s352_s23 = scalar_lea.vmem [#allocation11], %s351_s14  ;;  %s2580_s16 = scalar_lea.sflag [#allocation5], %s351_s14 }
 0x334   : > { %s2592_s15 = sshll.u32 %s352_s23, 4  ;;  %s4634_s15 = int_to_ptr.vmem [resolvable:$true] %s2592_s15 }
 0x335   : > { %3218 = vmatmul.mubr.bf16.gmra.mrb[40].mxu1 %v4406_v8  ;;  %v3475_v8 = vld [vmem:[#allocation3 + $0x14] ss:$8 sps:$4 sm:$0xff]   ;;  %s3606_s30 = scalar_lea.vmem %s4634_s15, 16  ;;  %p3613_p2 = scmp.lt.s32.totalorder %s4634_s15, %s3611_s8 }
 0x336   : > { %3010 = vmatpush3.bf16.msra.mxu1 %v3464_v11  ;;  %3221 = vmatprep.mubr.bf16.mxu1 %v4409_v14  ;;  %v3474_v11 = vld [vmem:[#allocation3] ss:$8 sps:$4 sm:$0xff]   ;;  %v3477_v14 = vld [vmem:[#allocation3 + $0x24] ss:$8 sps:$4 sm:$0xff]   ;;  %p3607_p8 = scmp.ne.s32.totalorder %s4634_s15, %s3606_s30  ;;  %p3614_p3 = scmp.lt.s32.totalorder %s3612_s10, %s3606_s30 }
 0x337   : > { %3011 = vmatprep.subr.bf16.mxu1 %v3465_v16  ;;  %v3476_v16 = vld [vmem:[#allocation3 + $0x10] ss:$8 sps:$4 sm:$0xff]  }
 0x338   : > { %p3608_p11 = pnand %p3607_p8, %p4844_p10  ;;  %p3615_p5 = por %p3614_p3, %p3613_p2 }
 0x33a   : > { %3012 = vmatpush3.bf16.msra.mxu1 %v3466_v13  ;;  %v3478_v13 = vld [vmem:[#allocation3 + $0x20] ss:$8 sps:$4 sm:$0xff]   ;;  %p3609_p0 = pneg %p3608_p11 }
 0x33b   : > { %3013 = vmatprep.subr.bf16.mxu1 %v3469_v23  ;;  %v3479_v23 = vld [vmem:[#allocation3 + $0x34] ss:$8 sps:$4 sm:$0xff]  }
 0x33c   : > { %p3616_p6 = pnand %p3615_p5, %p3609_p0 }
 0x33d   : > { %3222 = vmatmul.mubr.bf16.gmra.mrb[44].mxu1 %v4416_v5  ;;  %v3482_v5 = vld [vmem:[#allocation3 + $0x40] ss:$8 sps:$4 sm:$0xff]  }
 0x33e   : > { %3014 = vmatpush3.bf16.msra.mxu1 %v3470_v29  ;;  %1852 = vmatprep.mubr.bf16.mxu1 %v3473_v22  ;;  %v3481_v29 = vld [vmem:[#allocation3 + $0x44] ss:$8 sps:$4 sm:$0xff]  }
 0x33f   : > { %3015 = vmatprep.subr.bf16.mxu1 %v3471_v63  ;;  %v3483_v63 = vld [vmem:[#allocation3 + $0x54] ss:$8 sps:$4 sm:$0xff]   ;;  %v3485_v22 = vld [vmem:[#allocation3 + $0x64] ss:$8 sps:$4 sm:$0xff]  }
 0x342   : > { %3016 = vmatpush3.bf16.msra.mxu1 %v3472_v24  ;;  %v3484_v24 = vld [vmem:[#allocation3 + $0x50] ss:$8 sps:$4 sm:$0xff]  }
 0x345   : > { %1853 = vmatmul.mubr.bf16.vlgmr.msra.gmra.mrb[48].mxu1 %v3474_v11  ;;  %v3487_v11 = vld [vmem:[#allocation3 + $0x74] ss:$8 sps:$4 sm:$0xff]  }
 0x346   : > { %1860 = vmatprep.mubr.bf16.mxu1 %v3475_v8  ;;  %v3486_v8 = vld [vmem:[#allocation3 + $0x60] ss:$8 sps:$4 sm:$0xff]  }
 0x34d   : > { %1861 = vmatmul.mubr.bf16.gmra.mrb[52].mxu1 %v3476_v16  ;;  %v3489_v16 = vld [vmem:[#allocation3 + $0x84] ss:$8 sps:$4 sm:$0xff]  }
 0x34e   : > { %1868 = vmatprep.mubr.bf16.mxu1 %v3477_v14  ;;  %v3488_v14 = vld [vmem:[#allocation3 + $0x70] ss:$8 sps:$4 sm:$0xff]  }
 0x355   : > { %1869 = vmatmul.mubr.bf16.gmra.mrb[56].mxu1 %v3478_v13  ;;  %v3490_v13 = vld [vmem:[#allocation3 + $0x80] ss:$8 sps:$4 sm:$0xff]  }
 0x356   : > { %1876 = vmatprep.mubr.bf16.mxu1 %v3479_v23  ;;  %v3492_v23 = vld [vmem:[#allocation3 + $0x90] ss:$8 sps:$4 sm:$0xff]  }
 0x35d   : > { %1877 = vmatmul.mubr.bf16.gmra.mrb[60].mxu1 %v3480_v1  ;;  %v3491_v1 = vld [vmem:[#allocation3 + $0x94] ss:$8 sps:$4 sm:$0xff]  }
 0x35e   : > { %1884 = vmatprep.mubr.bf16.mxu1 %v3481_v29 }
 0x365   : > { %1885 = vmatmul.mubr.bf16.gmra.mrb[64].mxu1 %v3482_v5  ;;  %v3493_v5 = vld [vmem:[#allocation3 + $0xa4] ss:$8 sps:$4 sm:$0xff]  }
 0x366   : > { %1892 = vmatprep.mubr.bf16.mxu1 %v3483_v63 }
 0x36d   : > { %1893 = vmatmul.mubr.bf16.gmra.mrb[68].mxu1 %v3484_v24 }
 0x36e   : > { %1900 = vmatprep.mubr.bf16.mxu1 %v3485_v22 }
 0x375   : > { %1901 = vmatmul.mubr.bf16.gmra.mrb[72].mxu1 %v3486_v8 }
 0x376   : > { %1908 = vmatprep.mubr.bf16.mxu1 %v3487_v11 }
 0x37d   : > { %1909 = vmatmul.mubr.bf16.gmra.mrb[76].mxu1 %v3488_v14 }
 0x37e   : > { %1916 = vmatprep.mubr.bf16.mxu1 %v3489_v16 }
 0x385   : > { %1917 = vmatmul.mubr.bf16.gmra.mrb[80].mxu1 %v3490_v13 }
 0x386   : > { %1924 = vmatprep.mubr.bf16.mxu1 %v3491_v1 }
 0x38d   : > { %1925 = vmatmul.mubr.bf16.gmra.mrb[84].mxu1 %v3492_v23 }
 0x38e   : > { %1932 = vmatprep.mubr.bf16.mxu1 %v3493_v5 }
 0x395   : > { %1933 = vmatmul.mubr.bf16.gmra.mrb[88].mxu1 %v4082_v20  ;;  %v4433_v20 = vpop.permute.xlu0 %1453 }
 0x396   : > { %1940 = vmatprep.mubr.bf16.mxu1 %v4084_v21  ;;  %4789 = vst [vmem:[#allocation53_spill] sm:$0xff] %v4433_v20  ;;  %v4435_v21 = vpop.permute.xlu1 %1458 }
 0x397   : > { %4790 = vst [vmem:[#allocation54_spill] sm:$0xff] %v4435_v21 }
 0x39a   : > { %v4440_v29 = vpop.permute.xlu1 %1468 }
 0x39b   : > { %4792 = vst [vmem:[#allocation56_spill] sm:$0xff] %v4440_v29 }
 0x39d   : > { %1941 = vmatmul.mubr.bf16.gmra.mrb[92].mxu1 %v4100_v26  ;;  %v4437_v26 = vpop.permute.xlu0 %1463 }
 0x39e   : > { %1948 = vmatprep.mubr.bf16.mxu1 %v4102_v27  ;;  %4791 = vst [vmem:[#allocation55_spill] sm:$0xff] %v4437_v26 }
 0x3a5   : > { %1949 = vmatmul.mubr.bf16.gmra.mrb[96].mxu1 %v4118_v32 }
 0x3a6   : > { %1956 = vmatprep.mubr.bf16.mxu1 %v4120_v33 }
 0x3ad   : > { %1957 = vmatmul.mubr.bf16.gmra.mrb[100].mxu1 %v4136_v38 }
 0x3ae   : > { %1964 = vmatprep.mubr.bf16.mxu1 %v4138_v39 }
 0x3b5   : > { %1965 = vmatmul.mubr.bf16.gmra.mrb[104].mxu1 %v4154_v44 }
 0x3b6   : > { %1972 = vmatprep.mubr.bf16.mxu1 %v4156_v45 }
 0x3bd   : > { %1973 = vmatmul.mubr.bf16.gmra.mrb[108].mxu1 %v4166_v48  ;;  %v4444_v48 = vpop.permute.xlu0 %1473 }
 0x3be   : > { %4793 = vst [vmem:[#allocation57_spill] sm:$0xff] %v4444_v48 }
 0x3c1   : > { %v4447_v16 = vpop.permute.xlu0 %1483 }
 0x3c2   : > { %4794 = vst [vmem:[#allocation58_spill] sm:$0xff] %v4447_v16 }
 0x3f8   : > { %v3211_v27 = vpop.f32.mrb[32].mxu1 }
 0x3f9   : > { %v1622_v32 = vadd.f32 %v3211_v27, %v4437_v26  ;;  %v1613_v33 = vpop.f32.mrb[33].mxu1  ;;  %v4450_v27 = vpop.permute.xlu1 %1478 }
 0x3fa   : > { %v1614_v38 = vadd.f32 %v1613_v33, %v4433_v20  ;;  %v3212_v39 = vpop.f32.mrb[34].mxu1  ;;  %4795 = vst [vmem:[#allocation59_spill] sm:$0xff] %v4450_v27 }
 0x3fb   : > { %v1678_v44 = vmax.f32 %v1622_v32, 0.0  ;;  %v1625_v45 = vadd.f32 %v3212_v39, %v4440_v29  ;;  %v1616_v63 = vpop.f32.mrb[35].mxu1 }
 0x3fc   : > { %v1676_v24 = vmax.f32 %v1614_v38, 0.0  ;;  %v1617_v8 = vadd.f32 %v1616_v63, %v4435_v21 }
 0x3fd   : > { %2267 = vadd.xlane.f32.xlu1 %v1678_v44  ;;  %v1679_v22 = vmax.f32 %v1625_v45, 0.0  ;;  %v4453_v44 = vpop.permute.xlu1 %1488 }
 0x3fe   : > { %2263 = vadd.xlane.f32.xlu0 %v1676_v24  ;;  %v1677_v1 = vmax.f32 %v1617_v8, 0.0  ;;  %4796 = vst [vmem:[#allocation60_spill] sm:$0xff] %v4453_v44  ;;  %v4456_v8 = vpop.permute.xlu0 %1493 }
 0x3ff   : > { %4797 = vst [vmem:[#allocation61_spill] sm:$0xff] %v4456_v8 }
 0x400   : > { %v3215_v11 = vpop.f32.mrb[36].mxu1 }
 0x401   : > { %v1629_v14 = vpop.f32.mrb[37].mxu1  ;;  %2269 = vadd.xlane.f32.xlu1 %v1679_v22  ;;  %v1638_v23 = vadd.f32 %v3215_v11, %v4447_v16 }
 0x402   : > { %v3216_v13 = vpop.f32.mrb[38].mxu1  ;;  %v1630_v33 = vadd.f32 %v1629_v14, %v4444_v48  ;;  %v4459_v14 = vpop.permute.xlu0 %1503 }
 0x403   : > { %v1632_v5 = vpop.f32.mrb[39].mxu1  ;;  %v1682_v32 = vmax.f32 %v1638_v23, 0.0  ;;  %v1641_v24 = vadd.f32 %v3216_v13, %v4453_v44  ;;  %4798 = vst [vmem:[#allocation62_spill] sm:$0xff] %v4459_v14 }
 0x404   : > { %v1680_v63 = vmax.f32 %v1630_v33, 0.0  ;;  %v1633_v16 = vadd.f32 %v1632_v5, %v4450_v27  ;;  %v4462_v33 = vpop.permute.xlu1 %1498 }
 0x405   : > { %2265 = vadd.xlane.f32.xlu1 %v1677_v1  ;;  %v1683_v11 = vmax.f32 %v1641_v24, 0.0 }
 0x406   : > { %v4468_v10 = vpop.permute.xlu0 %1513 }
 0x408   : > { %v3219_v38 = vpop.f32.mrb[40].mxu1  ;;  %v4465_v5 = vpop.permute.xlu1 %1508 }
 0x409   : > { %v1645_v39 = vpop.f32.mrb[41].mxu1  ;;  %2275 = vadd.xlane.f32.xlu1 %v1682_v32  ;;  %v1681_v32 = vmax.f32 %v1633_v16, 0.0  ;;  %v1654_v21 = vadd.f32 %v3219_v38, %v4459_v14  ;;  %4799 = vst [vmem:[#allocation63_spill] sm:$0xff] %v4465_v5 }
 0x40a   : > { %v3220_v45 = vpop.f32.mrb[42].mxu1  ;;  %v1646_v44 = vadd.f32 %v1645_v39, %v4456_v8 }
 0x40b   : > { %v1648_v22 = vpop.f32.mrb[43].mxu1  ;;  %v1686_v13 = vmax.f32 %v1654_v21, 0.0  ;;  %v1657_v26 = vadd.f32 %v3220_v45, %v4465_v5 }
 0x40c   : > { %v1684_v20 = vmax.f32 %v1646_v44, 0.0  ;;  %v4473_v44 = vpop.permute.xlu0 %1523 }
 0x40d   : > { %2271 = vadd.xlane.f32.xlu1 %v1680_v63  ;;  %v1687_v39 = vmax.f32 %v1657_v26, 0.0 }
 0x410   : > { %v3223_v1 = vpop.f32.mrb[44].mxu1 }
 0x411   : > { %v1661_v23 = vpop.f32.mrb[45].mxu1  ;;  %2277 = vadd.xlane.f32.xlu1 %v1683_v11 }
 0x412   : > { %v3224_v48 = vpop.f32.mrb[46].mxu1 }
 0x413   : > { %v1664_v29 = vpop.f32.mrb[47].mxu1 }
 0x415   : > { %2273 = vadd.xlane.f32.xlu1 %v1681_v32  ;;  %v1649_v32 = vadd.f32 %v1648_v22, %v4462_v33 }
 0x417   : > { %v1685_v2 = vmax.f32 %v1649_v32, 0.0 }
 0x418   : > { %v3017_v63 = vpop.f32.mrb[48].mxu1 }
 0x419   : > { %v3018_v24 = vpop.f32.mrb[49].mxu1  ;;  %2283 = vadd.xlane.f32.xlu1 %v1686_v13 }
 0x41a   : > { %v3019_v27 = vadd.f32 %v3018_v24, %v3017_v63  ;;  %v3020_v11 = vpop.f32.mrb[50].mxu1 }
 0x41b   : > { %v3021_v16 = vpop.f32.mrb[51].mxu1 }
 0x41c   : > { %v1855_v38 = vadd.f32 %v3019_v27, %v4171_v50  ;;  %v3022_v14 = vadd.f32 %v3021_v16, %v3020_v11  ;;  %v1670_v50 = vadd.f32 %v3223_v1, %v4473_v44  ;;  %v4481_v11 = vpop.permute.xlu1 %1518 }
 0x41d   : > { %2279 = vadd.xlane.f32.xlu1 %v1684_v20 }
 0x41e   : > { %v1858_v21 = vadd.f32 %v3022_v14, %v4175_v52  ;;  %v1981_v13 = vmax.f32 %v1855_v38, 0.0  ;;  %v1690_v22 = vmax.f32 %v1670_v50, 0.0  ;;  %v1662_v14 = vadd.f32 %v1661_v23, %v4468_v10 }
 0x420   : > { %v1982_v8 = vmax.f32 %v1858_v21, 0.0  ;;  %v3023_v17 = vpop.f32.mrb[52].mxu1  ;;  %v1688_v32 = vmax.f32 %v1662_v14, 0.0  ;;  %v4487_v23 = vpop.permute.xlu1 %1528 }
 0x421   : > { %v3024_v63 = vpop.f32.mrb[53].mxu1  ;;  %2285 = vadd.xlane.f32.xlu1 %v1687_v39 }
 0x422   : > { %v4475_v45 = vpack.c.bf16 %v1982_v8, %v1981_v13  ;;  %v3025_v24 = vadd.f32 %v3024_v63, %v3023_v17  ;;  %v3026_v5 = vpop.f32.mrb[54].mxu1  ;;  %v1673_v63 = vadd.f32 %v3224_v48, %v4487_v23 }
 0x423   : > { %v3027_v20 = vpop.f32.mrb[55].mxu1 }
 0x424   : > { %v1863_v52 = vadd.f32 %v3025_v24, %v4181_v55  ;;  %v3028_v26 = vadd.f32 %v3027_v20, %v3026_v5  ;;  %v1665_v55 = vadd.f32 %v1664_v29, %v4481_v11  ;;  %v1691_v14 = vmax.f32 %v1673_v63, 0.0 }
 0x425   : > { %2281 = vadd.xlane.f32.xlu1 %v1685_v2 }
 0x426   : > { %v1866_v27 = vadd.f32 %v3028_v26, %v4183_v56  ;;  %v1983_v16 = vmax.f32 %v1863_v52, 0.0  ;;  %v1689_v24 = vmax.f32 %v1665_v55, 0.0 }
 0x428   : > { %v1984_v8 = vmax.f32 %v1866_v27, 0.0  ;;  %v3029_v38 = vpop.f32.mrb[56].mxu1 }
 0x429   : > { %v3030_v17 = vpop.f32.mrb[57].mxu1  ;;  %2291 = vadd.xlane.f32.xlu1 %v1690_v22 }
 0x42a   : > { %v4483_v21 = vpack.c.bf16 %v1984_v8, %v1983_v16  ;;  %v3031_v1 = vadd.f32 %v3030_v17, %v3029_v38  ;;  %v3032_v39 = vpop.f32.mrb[58].mxu1 }
 0x42b   : > { %v3033_v2 = vpop.f32.mrb[59].mxu1 }
 0x42c   : > { %v1871_v56 = vadd.f32 %v3031_v1, %v4189_v59  ;;  %v3034_v5 = vadd.f32 %v3033_v2, %v3032_v39 }
 0x42d   : > { %2287 = vadd.xlane.f32.xlu1 %v1688_v32 }
 0x42e   : > { %v1874_v13 = vadd.f32 %v3034_v5, %v4191_v61  ;;  %v1985_v50 = vmax.f32 %v1871_v56, 0.0 }
 0x430   : > { %v1986_v20 = vmax.f32 %v1874_v13, 0.0  ;;  %v3035_v52 = vpop.f32.mrb[60].mxu1 }
 0x431   : > { %v3036_v26 = vpop.f32.mrb[61].mxu1  ;;  %2289 = vadd.xlane.f32.xlu1 %v1689_v24 }
 0x432   : > { %v4491_v27 = vpack.c.bf16 %v1986_v20, %v1985_v50  ;;  %v3037_v29 = vadd.f32 %v3036_v26, %v3035_v52  ;;  %v3038_v22 = vpop.f32.mrb[62].mxu1 }
 0x433   : > { %v3039_v59 = vpop.f32.mrb[63].mxu1 }
 0x434   : > { %v1879_v16 = vadd.f32 %v3037_v29, %v4201_v15  ;;  %v3040_v8 = vadd.f32 %v3039_v59, %v3038_v22  ;;  %v4800_v29 = vld [vmem:[#allocation20_spill] sm:$0xff]  ;;  %v4801_v59 = vld [vmem:[#allocation21_spill] sm:$0xff] }
 0x435   : > { %2293 = vadd.xlane.f32.xlu1 %v1691_v14 }
 0x436   : > { %v1882_v61 = vadd.f32 %v3040_v8, %v4204_v19  ;;  %v1987_v38 = vmax.f32 %v1879_v16, 0.0 }
 0x438   : > { %v1988_v48 = vmax.f32 %v1882_v61, 0.0  ;;  %v3041_v17 = vpop.f32.mrb[64].mxu1 }
 0x439   : > { %v3042_v1 = vpop.f32.mrb[65].mxu1 }
 0x43a   : > { %v4495_v39 = vpack.c.bf16 %v1988_v48, %v1987_v38  ;;  %v3043_v32 = vadd.f32 %v3042_v1, %v3041_v17  ;;  %v3044_v55 = vpop.f32.mrb[66].mxu1 }
 0x43b   : > { %v3045_v2 = vpop.f32.mrb[67].mxu1 }
 0x43c   : > { %v1887_v56 = vadd.f32 %v3043_v32, %v4215_v42  ;;  %v3046_v5 = vadd.f32 %v3045_v2, %v3044_v55  ;;  %v4802_v32 = vld [vmem:[#allocation22_spill] sm:$0xff] }
 0x43e   : > { %v1890_v13 = vadd.f32 %v3046_v5, %v4217_v60  ;;  %v1989_v63 = vmax.f32 %v1887_v56, 0.0  ;;  %v4803_v56 = vld [vmem:[#allocation23_spill] sm:$0xff] }
 0x440   : > { %v1990_v15 = vmax.f32 %v1890_v13, 0.0  ;;  %v3047_v24 = vpop.f32.mrb[68].mxu1 }
 0x441   : > { %v3048_v50 = vpop.f32.mrb[69].mxu1 }
 0x442   : > { %v4499_v20 = vpack.c.bf16 %v1990_v15, %v1989_v63  ;;  %v3049_v19 = vadd.f32 %v3048_v50, %v3047_v24  ;;  %v3050_v52 = vpop.f32.mrb[70].mxu1 }
 0x443   : > { %v3051_v26 = vpop.f32.mrb[71].mxu1 }
 0x444   : > { %v1895_v22 = vadd.f32 %v3049_v19, %v4800_v29  ;;  %v3052_v14 = vadd.f32 %v3051_v26, %v3050_v52  ;;  %v4804_v29 = vld [vmem:[#allocation24_spill] sm:$0xff] }
 0x446   : > { %v1898_v16 = vadd.f32 %v3052_v14, %v4801_v59  ;;  %v1991_v8 = vmax.f32 %v1895_v22, 0.0  ;;  %v4805_v59 = vld [vmem:[#allocation25_spill] sm:$0xff] }
 0x448   : > { %v1992_v61 = vmax.f32 %v1898_v16, 0.0  ;;  %v3053_v42 = vpop.f32.mrb[72].mxu1 }
 0x449   : > { %v3054_v38 = vpop.f32.mrb[73].mxu1 }
 0x44a   : > { %v4503_v48 = vpack.c.bf16 %v1992_v61, %v1991_v8  ;;  %v3055_v60 = vadd.f32 %v3054_v38, %v3053_v42  ;;  %v3056_v17 = vpop.f32.mrb[74].mxu1 }
 0x44b   : > { %v3057_v1 = vpop.f32.mrb[75].mxu1 }
 0x44c   : > { %v1903_v55 = vadd.f32 %v3055_v60, %v4802_v32  ;;  %v3058_v2 = vadd.f32 %v3057_v1, %v3056_v17 }
 0x44e   : > { %v1906_v5 = vadd.f32 %v3058_v2, %v4803_v56  ;;  %v1993_v13 = vmax.f32 %v1903_v55, 0.0 }
 0x450   : > { %v1994_v63 = vmax.f32 %v1906_v5, 0.0  ;;  %v3059_v15 = vpop.f32.mrb[76].mxu1 }
 0x451   : > { %v3060_v24 = vpop.f32.mrb[77].mxu1 }
 0x452   : > { %v4507_v50 = vpack.c.bf16 %v1994_v63, %v1993_v13  ;;  %v3061_v19 = vadd.f32 %v3060_v24, %v3059_v15  ;;  %v3062_v52 = vpop.f32.mrb[78].mxu1 }
 0x453   : > { %v3063_v26 = vpop.f32.mrb[79].mxu1 }
 0x454   : > { %v1911_v22 = vadd.f32 %v3061_v19, %v4804_v29  ;;  %v3064_v14 = vadd.f32 %v3063_v26, %v3062_v52 }
 0x456   : > { %v1914_v16 = vadd.f32 %v3064_v14, %v4805_v59  ;;  %v1995_v8 = vmax.f32 %v1911_v22, 0.0 }
 0x458   : > { %v1996_v61 = vmax.f32 %v1914_v16, 0.0  ;;  %v3065_v42 = vpop.f32.mrb[80].mxu1 }
 0x459   : > { %v3066_v38 = vpop.f32.mrb[81].mxu1 }
 0x45a   : > { %v4511_v60 = vpack.c.bf16 %v1996_v61, %v1995_v8  ;;  %v3067_v17 = vadd.f32 %v3066_v38, %v3065_v42  ;;  %v3068_v1 = vpop.f32.mrb[82].mxu1 }
 0x45b   : > { %v3069_v32 = vpop.f32.mrb[83].mxu1 }
 0x45c   : > { %v1919_v55 = vadd.f32 %v3067_v17, %v4169_v49  ;;  %v3070_v2 = vadd.f32 %v3069_v32, %v3068_v1 }
 0x45e   : > { %v1922_v56 = vadd.f32 %v3070_v2, %v4173_v51  ;;  %v1997_v5 = vmax.f32 %v1919_v55, 0.0 }
 0x460   : > { %v1998_v13 = vmax.f32 %v1922_v56, 0.0  ;;  %v3071_v63 = vpop.f32.mrb[84].mxu1 }
 0x461   : > { %v3072_v15 = vpop.f32.mrb[85].mxu1 }
 0x462   : > { %v3073_v24 = vadd.f32 %v3072_v15, %v3071_v63  ;;  %v3074_v19 = vpop.f32.mrb[86].mxu1  ;;  %v2021_v52 = vpack.c.bf16 %v1998_v13, %v1997_v5 }
 0x463   : > { %v3075_v26 = vpop.f32.mrb[87].mxu1 }
 0x464   : > { %v1927_v29 = vadd.f32 %v3073_v24, %v4177_v53  ;;  %v3076_v22 = vadd.f32 %v3075_v26, %v3074_v19  ;;  %3113 = vmatprep.subr.bf16.mxu0 %v2021_v52 }
 0x465   : > { %3114 = vmatpush3.bf16.msra.mxu0 %v4475_v45 }
 0x466   : > { %v1930_v14 = vadd.f32 %v3076_v22, %v4179_v54  ;;  %v1999_v49 = vmax.f32 %v1927_v29, 0.0 }
 0x468   : > { %v2000_v59 = vmax.f32 %v1930_v14, 0.0  ;;  %v3077_v16 = vpop.f32.mrb[88].mxu1 }
 0x469   : > { %v3078_v51 = vpop.f32.mrb[89].mxu1 }
 0x46a   : > { %v3079_v8 = vadd.f32 %v3078_v51, %v3077_v16  ;;  %v3080_v61 = vpop.f32.mrb[90].mxu1  ;;  %v2022_v42 = vpack.c.bf16 %v2000_v59, %v1999_v49 }
 0x46b   : > { %v3081_v38 = vpop.f32.mrb[91].mxu1 }
 0x46c   : > { %v1935_v17 = vadd.f32 %v3079_v8, %v4185_v57  ;;  %v3082_v1 = vadd.f32 %v3081_v38, %v3080_v61  ;;  %3115 = vmatprep.subr.bf16.mxu0 %v2022_v42 }
 0x46d   : > { %3116 = vmatpush3.bf16.msra.mxu0 %v4483_v21 }
 0x46e   : > { %v1938_v53 = vadd.f32 %v3082_v1, %v4187_v58  ;;  %v2001_v32 = vmax.f32 %v1935_v17, 0.0 }
 0x470   : > { %v2002_v45 = vmax.f32 %v1938_v53, 0.0  ;;  %v3083_v55 = vpop.f32.mrb[92].mxu1 }
 0x471   : > { %v3084_v54 = vpop.f32.mrb[93].mxu1 }
 0x472   : > { %v3085_v2 = vadd.f32 %v3084_v54, %v3083_v55  ;;  %v3086_v56 = vpop.f32.mrb[94].mxu1  ;;  %v2023_v5 = vpack.c.bf16 %v2002_v45, %v2001_v32 }
 0x473   : > { %v3087_v13 = vpop.f32.mrb[95].mxu1 }
 0x474   : > { %v1943_v63 = vadd.f32 %v3085_v2, %v4194_v4  ;;  %v3088_v15 = vadd.f32 %v3087_v13, %v3086_v56  ;;  %3117 = vmatprep.subr.bf16.mxu0 %v2023_v5 }
 0x475   : > { %3118 = vmatpush3.bf16.msra.mxu0 %v4491_v27 }
 0x476   : > { %v1946_v57 = vadd.f32 %v3088_v15, %v4197_v7  ;;  %v2003_v24 = vmax.f32 %v1943_v63, 0.0 }
 0x478   : > { %v2004_v21 = vmax.f32 %v1946_v57, 0.0  ;;  %v3089_v19 = vpop.f32.mrb[96].mxu1 }
 0x479   : > { %v3090_v58 = vpop.f32.mrb[97].mxu1 }
 0x47a   : > { %v3091_v52 = vadd.f32 %v3090_v58, %v3089_v19  ;;  %v3092_v26 = vpop.f32.mrb[98].mxu1  ;;  %v2024_v29 = vpack.c.bf16 %v2004_v21, %v2003_v24 }
 0x47b   : > { %v3093_v22 = vpop.f32.mrb[99].mxu1 }
 0x47c   : > { %v1951_v14 = vadd.f32 %v3091_v52, %v4207_v28  ;;  %v3094_v49 = vadd.f32 %v3093_v22, %v3092_v26  ;;  %3119 = vmatprep.subr.bf16.mxu0 %v2024_v29  ;;  %v4814_v26 = vld [vmem:[#allocation34_spill] sm:$0xff] }
 0x47d   : > { %3120 = vmatpush3.bf16.msra.mxu0 %v4495_v39 }
 0x47e   : > { %v1954_v4 = vadd.f32 %v3094_v49, %v4211_v35  ;;  %v2005_v59 = vmax.f32 %v1951_v14, 0.0  ;;  %v4815_v14 = vld [vmem:[#allocation35_spill] sm:$0xff] }
 0x480   : > { %v2006_v27 = vmax.f32 %v1954_v4, 0.0  ;;  %v3095_v16 = vpop.f32.mrb[100].mxu1 }
 0x481   : > { %v3096_v7 = vpop.f32.mrb[101].mxu1 }
 0x482   : > { %v3097_v51 = vadd.f32 %v3096_v7, %v3095_v16  ;;  %v3098_v8 = vpop.f32.mrb[102].mxu1  ;;  %v2025_v61 = vpack.c.bf16 %v2006_v27, %v2005_v59 }
 0x483   : > { %v3099_v42 = vpop.f32.mrb[103].mxu1 }
 0x484   : > { %v1959_v38 = vadd.f32 %v3097_v51, %v4222_v6  ;;  %v3100_v17 = vadd.f32 %v3099_v42, %v3098_v8  ;;  %3121 = vmatprep.subr.bf16.mxu0 %v2025_v61  ;;  %v4816_v42 = vld [vmem:[#allocation36_spill] sm:$0xff] }
 0x485   : > { %3122 = vmatpush3.bf16.msra.mxu0 %v4499_v20 }
 0x486   : > { %v1962_v28 = vadd.f32 %v3100_v17, %v4225_v9  ;;  %v2007_v1 = vmax.f32 %v1959_v38, 0.0 }
 0x488   : > { %v2008_v39 = vmax.f32 %v1962_v28, 0.0  ;;  %v3101_v53 = vpop.f32.mrb[104].mxu1  ;;  %v4817_v28 = vld [vmem:[#allocation37_spill] sm:$0xff] }
 0x489   : > { %v3102_v35 = vpop.f32.mrb[105].mxu1 }
 0x48a   : > { %v3103_v32 = vadd.f32 %v3102_v35, %v3101_v53  ;;  %v3104_v45 = vpop.f32.mrb[106].mxu1  ;;  %v2026_v55 = vpack.c.bf16 %v2008_v39, %v2007_v1 }
 0x48b   : > { %v3105_v54 = vpop.f32.mrb[107].mxu1 }
 0x48c   : > { %v1967_v2 = vadd.f32 %v3103_v32, %v4235_v40  ;;  %v3106_v56 = vadd.f32 %v3105_v54, %v3104_v45  ;;  %3123 = vmatprep.subr.bf16.mxu0 %v2026_v55 }
 0x48d   : > { %3124 = vmatpush3.bf16.msra.mxu0 %v4503_v48 }
 0x48e   : > { %v1970_v6 = vadd.f32 %v3106_v56, %v4239_v62  ;;  %v2009_v5 = vmax.f32 %v1967_v2, 0.0  ;;  %v4806_v62 = vld [vmem:[#allocation26_spill] sm:$0xff] }
 0x48f   : > { %v4818_v56 = vld [vmem:[#allocation38_spill] sm:$0xff] }
 0x490   : > { %v2010_v20 = vmax.f32 %v1970_v6, 0.0  ;;  %v3107_v13 = vpop.f32.mrb[108].mxu1 }
 0x491   : > { %v3108_v9 = vpop.f32.mrb[109].mxu1 }
 0x492   : > { %v3109_v63 = vadd.f32 %v3108_v9, %v3107_v13  ;;  %v3110_v15 = vpop.f32.mrb[110].mxu1  ;;  %v2027_v57 = vpack.c.bf16 %v2010_v20, %v2009_v5  ;;  %v4819_v20 = vld [vmem:[#allocation39_spill] sm:$0xff] }
 0x493   : > { %v3111_v24 = vpop.f32.mrb[111].mxu1 }
 0x494   : > { %v1975_v21 = vadd.f32 %v3109_v63, %v4250_v31  ;;  %v3112_v19 = vadd.f32 %v3111_v24, %v3110_v15  ;;  %3125 = vmatprep.subr.bf16.mxu0 %v2027_v57  ;;  %v4807_v31 = vld [vmem:[#allocation27_spill] sm:$0xff] }
 0x495   : > { %3126 = vmatpush3.bf16.msra.mxu0 %v4507_v50 }
 0x496   : > { %v1978_v40 = vadd.f32 %v3112_v19, %v4253_v37  ;;  %v2011_v58 = vmax.f32 %v1975_v21, 0.0  ;;  %v4808_v37 = vld [vmem:[#allocation28_spill] sm:$0xff] }
 0x498   : > { %v2012_v48 = vmax.f32 %v1978_v40, 0.0 }
 0x49a   : > { %v2028_v52 = vpack.c.bf16 %v2012_v48, %v2011_v58  ;;  %v4820_v58 = vld [vmem:[#allocation40_spill] sm:$0xff] }
 0x49c   : > { %3127 = vmatprep.subr.bf16.mxu0 %v2028_v52 }
 0x49d   : > { %3128 = vmatpush3.bf16.msra.mxu0 %v4511_v60 }
 0x4a0   : > { %2062 = vmatmul.mubr.bf16.vlgmr.msra.gmra.mrb[64].mxu0 %v4288_v30  ;;  %v4809_v30 = vld [vmem:[#allocation29_spill] sm:$0xff] }
 0x4a1   : > { %2069 = vmatprep.mubr.bf16.mxu0 %v4291_v18  ;;  %v4810_v18 = vld [vmem:[#allocation30_spill] sm:$0xff] }
 0x4a8   : > { %2070 = vmatmul.mubr.bf16.gmra.mrb[68].mxu0 %v4295_v34  ;;  %v4811_v34 = vld [vmem:[#allocation31_spill] sm:$0xff] }
 0x4a9   : > { %2077 = vmatprep.mubr.bf16.mxu0 %v4297_v36  ;;  %v4812_v36 = vld [vmem:[#allocation32_spill] sm:$0xff] }
 0x4b0   : > { %2078 = vmatmul.mubr.bf16.gmra.mrb[72].mxu0 %v4301_v3  ;;  %v4813_v3 = vld [vmem:[#allocation33_spill] sm:$0xff] }
 0x4b1   : > { %2085 = vmatprep.mubr.bf16.mxu0 %v4303_v41 }
 0x4b8   : > { %2086 = vmatmul.mubr.bf16.gmra.mrb[76].mxu0 %v4307_v46 }
 0x4b9   : > { %2093 = vmatprep.mubr.bf16.mxu0 %v4309_v43 }
 0x4c0   : > { %2094 = vmatmul.mubr.bf16.gmra.mrb[80].mxu0 %v4806_v62  ;;  %v4821_v62 = vld [vmem:[#allocation41_spill] sm:$0xff] }
 0x4c1   : > { %2101 = vmatprep.mubr.bf16.mxu0 %v4807_v31 }
 0x4c8   : > { %2102 = vmatmul.mubr.bf16.gmra.mrb[84].mxu0 %v4808_v37 }
 0x4c9   : > { %2109 = vmatprep.mubr.bf16.mxu0 %v4809_v30 }
 0x4d0   : > { %2110 = vmatmul.mubr.bf16.gmra.mrb[88].mxu0 %v4810_v18 }
 0x4d1   : > { %2117 = vmatprep.mubr.bf16.mxu0 %v4811_v34 }
 0x4d8   : > { %2118 = vmatmul.mubr.bf16.gmra.mrb[92].mxu0 %v4812_v36 }
 0x4d9   : > { %3241 = vmatprep.mubr.bf16.mxu0 %v4813_v3 }
 0x573   : > { %v3129_v41 = vpop.f32.mrb[64].mxu0 }
 0x574   : > { %v3130_v46 = vpop.f32.mrb[65].mxu0 }
 0x575   : > { %v3131_v50 = vadd.f32 %v3130_v46, %v3129_v41  ;;  %v3132_v43 = vpop.f32.mrb[66].mxu0 }
 0x576   : > { %v3133_v60 = vpop.f32.mrb[67].mxu0 }
 0x577   : > { %v2064_v29 = vadd.f32 %v3131_v50, %v4814_v26  ;;  %v3134_v22 = vadd.f32 %v3133_v60, %v3132_v43  ;;  %v4822_v50 = vld [vmem:[#allocation42_spill] sm:$0xff]  ;;  %v4823_v26 = vld [vmem:[#allocation43_spill] sm:$0xff] }
 0x579   : > { %v2067_v49 = vadd.f32 %v3134_v22, %v4815_v14  ;;  %v2126_v4 = vmax.f32 %v2064_v29, 0.0 }
 0x57b   : > { %v2127_v59 = vmax.f32 %v2067_v49, 0.0  ;;  %v3135_v27 = vpop.f32.mrb[68].mxu0 }
 0x57c   : > { %v3136_v16 = vpop.f32.mrb[69].mxu0 }
 0x57d   : > { %v3137_v7 = vadd.f32 %v3136_v16, %v3135_v27  ;;  %v3138_v51 = vpop.f32.mrb[70].mxu0  ;;  %v2142_v8 = vpack.c.bf16 %v2127_v59, %v2126_v4 }
 0x57e   : > { %v3139_v61 = vpop.f32.mrb[71].mxu0 }
 0x57f   : > { %v2072_v38 = vadd.f32 %v3137_v7, %v4816_v42  ;;  %v3140_v17 = vadd.f32 %v3139_v61, %v3138_v51  ;;  %3225 = vmatprep.subr.bf16.mxu0 %v2142_v8  ;;  %v4824_v61 = vld [vmem:[#allocation44_spill] sm:$0xff] }
 0x580   : > { %3226 = vmatpush3.bf16.msra.mxu0 %v2142_v8 }
 0x581   : > { %v2075_v1 = vadd.f32 %v3140_v17, %v4817_v28  ;;  %v2128_v39 = vmax.f32 %v2072_v38, 0.0 }
 0x583   : > { %v2129_v53 = vmax.f32 %v2075_v1, 0.0  ;;  %v3141_v35 = vpop.f32.mrb[72].mxu0 }
 0x584   : > { %v3142_v32 = vpop.f32.mrb[73].mxu0 }
 0x585   : > { %v3143_v45 = vadd.f32 %v3142_v32, %v3141_v35  ;;  %v3144_v55 = vpop.f32.mrb[74].mxu0  ;;  %v2143_v54 = vpack.c.bf16 %v2129_v53, %v2128_v39 }
 0x586   : > { %v3145_v2 = vpop.f32.mrb[75].mxu0 }
 0x587   : > { %v2080_v6 = vadd.f32 %v3143_v45, %v4818_v56  ;;  %v3146_v5 = vadd.f32 %v3145_v2, %v3144_v55  ;;  %3227 = vmatprep.subr.bf16.mxu0 %v2143_v54 }
 0x588   : > { %3228 = vmatpush3.bf16.msra.mxu0 %v2143_v54 }
 0x589   : > { %v2083_v13 = vadd.f32 %v3146_v5, %v4819_v20  ;;  %v2130_v9 = vmax.f32 %v2080_v6, 0.0 }
 0x58b   : > { %v2131_v63 = vmax.f32 %v2083_v13, 0.0  ;;  %v3147_v15 = vpop.f32.mrb[76].mxu0 }
 0x58c   : > { %v3148_v57 = vpop.f32.mrb[77].mxu0 }
 0x58d   : > { %v3149_v24 = vadd.f32 %v3148_v57, %v3147_v15  ;;  %v3150_v21 = vpop.f32.mrb[78].mxu0  ;;  %v2144_v19 = vpack.c.bf16 %v2131_v63, %v2130_v9  ;;  %v4825_v57 = vld [vmem:[#allocation45_spill] sm:$0xff] }
 0x58e   : > { %v3151_v40 = vpop.f32.mrb[79].mxu0 }
 0x58f   : > { %v2088_v48 = vadd.f32 %v3149_v24, %v4820_v58  ;;  %v3152_v52 = vadd.f32 %v3151_v40, %v3150_v21  ;;  %3229 = vmatprep.subr.bf16.mxu0 %v2144_v19  ;;  %v4827_v40 = vld [vmem:[#allocation47_spill] sm:$0xff]  ;;  %v4828_v58 = vld [vmem:[#allocation48_spill] sm:$0xff] }
 0x590   : > { %3230 = vmatpush3.bf16.msra.mxu0 %v2144_v19 }
 0x591   : > { %v2091_v31 = vadd.f32 %v3152_v52, %v4821_v62  ;;  %v2132_v37 = vmax.f32 %v2088_v48, 0.0  ;;  %v4829_v48 = vld [vmem:[#allocation49_spill] sm:$0xff]  ;;  %v4830_v52 = vld [vmem:[#allocation50_spill] sm:$0xff]  ;;  %v4832_v62 = vld [vmem:[#allocation52_spill] sm:$0xff] }
 0x593   : > { %v2133_v30 = vmax.f32 %v2091_v31, 0.0  ;;  %v3153_v18 = vpop.f32.mrb[80].mxu0  ;;  %v3707_v31 = vmov 0.0  }
 0x594   : > { %v3154_v34 = vpop.f32.mrb[81].mxu0  ;;  %371 = vst.msk [vmem:[#allocation2 + $0x10] sm:$0xff] %vm368_vm0, %v3707_v31  ;;  %369 = vst.msk [vmem:[#allocation2] sm:$0xff] %vm368_vm0, %v3707_v31 }
 0x595   : > { %v3155_v36 = vadd.f32 %v3154_v34, %v3153_v18  ;;  %v3156_v3 = vpop.f32.mrb[82].mxu0  ;;  %v2145_v41 = vpack.c.bf16 %v2133_v30, %v2132_v37  ;;  %370 = vst.msk [vmem:[#allocation2 + $0x8] sm:$0xff] %vm368_vm0, %v3707_v31  ;;  %372 = vst.msk [vmem:[#allocation2 + $0x18] sm:$0xff] %vm368_vm0, %v3707_v31  ;;  %v4833_v30 = vld [vmem:[#allocation55_spill] sm:$0xff] }
 0x596   : > { %v3157_v46 = vpop.f32.mrb[83].mxu0  ;;  %373 = vst.msk [vmem:[#allocation2 + $0x20] sm:$0xff] %vm368_vm0, %v3707_v31  ;;  %374 = vst.msk [vmem:[#allocation2 + $0x28] sm:$0xff] %vm368_vm0, %v3707_v31 }
 0x597   : > { %v2096_v43 = vadd.f32 %v3155_v36, %v4822_v50  ;;  %v3158_v60 = vadd.f32 %v3157_v46, %v3156_v3  ;;  %3231 = vmatprep.subr.bf16.mxu0 %v2145_v41  ;;  %375 = vst.msk [vmem:[#allocation2 + $0x30] sm:$0xff] %vm368_vm0, %v3707_v31  ;;  %376 = vst.msk [vmem:[#allocation2 + $0x38] sm:$0xff] %vm368_vm0, %v3707_v31 }
 0x598   : > { %3232 = vmatpush3.bf16.msra.mxu0 %v2145_v41  ;;  %377 = vst.msk [vmem:[#allocation2 + $0x40] sm:$0xff] %vm368_vm0, %v3707_v31  ;;  %378 = vst.msk [vmem:[#allocation2 + $0x48] sm:$0xff] %vm368_vm0, %v3707_v31  ;;  %v4834_v41 = vld [vmem:[#allocation53_spill] sm:$0xff] }
 0x599   : > { %v2099_v29 = vadd.f32 %v3158_v60, %v4823_v26  ;;  %v2134_v22 = vmax.f32 %v2096_v43, 0.0  ;;  %379 = vst.msk [vmem:[#allocation2 + $0x50] sm:$0xff] %vm368_vm0, %v3707_v31  ;;  %380 = vst.msk [vmem:[#allocation2 + $0x58] sm:$0xff] %vm368_vm0, %v3707_v31  ;;  %v4835_v60 = vld [vmem:[#allocation56_spill] sm:$0xff] }
 0x59a   : > { %381 = vst.msk [vmem:[#allocation2 + $0x60] sm:$0xff] %vm368_vm0, %v3707_v31  ;;  %382 = vst.msk [vmem:[#allocation2 + $0x68] sm:$0xff] %vm368_vm0, %v3707_v31 }
 0x59b   : > { %v2135_v14 = vmax.f32 %v2099_v29, 0.0  ;;  %v3159_v49 = vpop.f32.mrb[84].mxu0  ;;  %383 = vst.msk [vmem:[#allocation2 + $0x70] sm:$0xff] %vm368_vm0, %v3707_v31  ;;  %384 = vst.msk [vmem:[#allocation2 + $0x78] sm:$0xff] %vm368_vm0, %v3707_v31 }
 0x59c   : > { %v3160_v4 = vpop.f32.mrb[85].mxu0 }
 0x59d   : > { %v3161_v59 = vadd.f32 %v3160_v4, %v3159_v49  ;;  %v3162_v27 = vpop.f32.mrb[86].mxu0  ;;  %v2146_v16 = vpack.c.bf16 %v2135_v14, %v2134_v22  ;;  %v4836_v4 = vld [vmem:[#allocation54_spill] sm:$0xff] }
 0x59e   : > { %v3163_v7 = vpop.f32.mrb[87].mxu0 }
 0x59f   : > { %v2104_v51 = vadd.f32 %v3161_v59, %v4367_v12  ;;  %v3164_v8 = vadd.f32 %v3163_v7, %v3162_v27  ;;  %3233 = vmatprep.subr.bf16.mxu0 %v2146_v16  ;;  %v4837_v7 = vld [vmem:[#allocation58_spill] sm:$0xff] }
 0x5a0   : > { %3234 = vmatpush3.bf16.msra.mxu0 %v2146_v16 }
 0x5a1   : > { %v2107_v42 = vadd.f32 %v3164_v8, %v4824_v61  ;;  %v2136_v38 = vmax.f32 %v2104_v51, 0.0 }
 0x5a3   : > { %v2137_v17 = vmax.f32 %v2107_v42, 0.0  ;;  %v3165_v28 = vpop.f32.mrb[88].mxu0 }
 0x5a4   : > { %v3166_v1 = vpop.f32.mrb[89].mxu0 }
 0x5a5   : > { %v3167_v39 = vadd.f32 %v3166_v1, %v3165_v28  ;;  %v3168_v53 = vpop.f32.mrb[90].mxu0  ;;  %v2147_v35 = vpack.c.bf16 %v2137_v17, %v2136_v38  ;;  %v4838_v17 = vld [vmem:[#allocation57_spill] sm:$0xff] }
 0x5a6   : > { %v3169_v32 = vpop.f32.mrb[91].mxu0 }
 0x5a7   : > { %v2112_v45 = vadd.f32 %v3167_v39, %v4373_v25  ;;  %v3170_v55 = vadd.f32 %v3169_v32, %v3168_v53  ;;  %3235 = vmatprep.subr.bf16.mxu0 %v2147_v35  ;;  %v4839_v53 = vld [vmem:[#allocation60_spill] sm:$0xff] }
 0x5a8   : > { %3236 = vmatpush3.bf16.msra.mxu0 %v2147_v35 }
 0x5a9   : > { %v2115_v12 = vadd.f32 %v3170_v55, %v4376_v0  ;;  %v2138_v54 = vmax.f32 %v2112_v45, 0.0  ;;  %v4826_v0 = vld [vmem:[#allocation46_spill] sm:$0xff] }
 0x5ab   : > { %v2139_v2 = vmax.f32 %v2115_v12, 0.0  ;;  %v3171_v56 = vpop.f32.mrb[92].mxu0 }
 0x5ac   : > { %v3172_v6 = vpop.f32.mrb[93].mxu0 }
 0x5ad   : > { %v3173_v5 = vadd.f32 %v3172_v6, %v3171_v56  ;;  %v3174_v20 = vpop.f32.mrb[94].mxu0  ;;  %v2148_v13 = vpack.c.bf16 %v2139_v2, %v2138_v54  ;;  %v4840_v54 = vld [vmem:[#allocation59_spill] sm:$0xff] }
 0x5ae   : > { %v3175_v9 = vpop.f32.mrb[95].mxu0 }
 0x5af   : > { %v2120_v63 = vadd.f32 %v3173_v5, %v4379_v47  ;;  %v3176_v15 = vadd.f32 %v3175_v9, %v3174_v20  ;;  %3237 = vmatprep.subr.bf16.mxu0 %v2148_v13  ;;  %v4831_v47 = vld [vmem:[#allocation51_spill] sm:$0xff]  ;;  %v4841_v5 = vld [vmem:[#allocation62_spill] sm:$0xff]  ;;  %v4842_v9 = vld [vmem:[#allocation61_spill] sm:$0xff] }
 0x5b0   : > { %3238 = vmatpush3.bf16.msra.mxu0 %v2148_v13 }
 0x5b1   : > { %v2123_v25 = vadd.f32 %v3176_v15, %v4825_v57  ;;  %v2140_v24 = vmax.f32 %v2120_v63, 0.0  ;;  %v4843_v57 = vld [vmem:[#allocation63_spill] sm:$0xff] }
 0x5b3   : > { %v2141_v21 = vmax.f32 %v2123_v25, 0.0 }
 0x5b5   : > { %v2149_v19 = vpack.c.bf16 %v2141_v21, %v2140_v24 }
 0x5b7   : > { %3239 = vmatprep.subr.bf16.mxu0 %v2149_v19 }
 0x5b8   : > { %3240 = vmatpush3.bf16.msra.mxu0 %v2149_v19 }
 0x5bb   : > { %3242 = vmatmul.mubr.bf16.vlgmr.msra.gmra.mrb[96].mxu0 %v4826_v0 }
 0x5bc   : > { %3245 = vmatprep.mubr.bf16.mxu0 %v4827_v40 }
 0x5c3   : > { %3246 = vmatmul.mubr.bf16.gmra.mrb[100].mxu0 %v4828_v58 }
 0x5c4   : > { %3249 = vmatprep.mubr.bf16.mxu0 %v4829_v48 }
 0x5cb   : > { %3250 = vmatmul.mubr.bf16.gmra.mrb[104].mxu0 %v4830_v52 }
 0x5cc   : > { %3253 = vmatprep.mubr.bf16.mxu0 %v4831_v47 }
 0x5d3   : > { %3254 = vmatmul.mubr.bf16.gmra.mrb[108].mxu0 %v4832_v62 }
 0x68e   : > { %v3243_v37 = vpop.f32.mrb[96].mxu0 }
 0x68f   : > { %v2193_v18 = vadd.f32 %v3243_v37, %v4833_v30  ;;  %v2184_v34 = vpop.f32.mrb[97].mxu0 }
 0x690   : > { %v3244_v36 = vpop.f32.mrb[98].mxu0  ;;  %v2185_v46 = vadd.f32 %v2184_v34, %v4834_v41 }
 0x691   : > { %v2249_v3 = vmax.f32 %v2193_v18, 0.0  ;;  %v2187_v50 = vpop.f32.mrb[99].mxu0  ;;  %v2196_v26 = vadd.f32 %v3244_v36, %v4835_v60 }
 0x692   : > { %v2247_v43 = vmax.f32 %v2185_v46, 0.0  ;;  %v2188_v59 = vadd.f32 %v2187_v50, %v4836_v4  ;;  %v2359_v50 = vld [vmem:[#allocation2] sm:$0xff]  ;;  %v2360_v4 = vld [vmem:[#allocation2 + $0x8] sm:$0xff] }
 0x693   : > { %2315 = vadd.xlane.f32.xlu0 %v2249_v3  ;;  %v2250_v49 = vmax.f32 %v2196_v26, 0.0  ;;  %v2361_v3 = vld [vmem:[#allocation2 + $0x10] sm:$0xff]  ;;  %v2362_v26 = vld [vmem:[#allocation2 + $0x18] sm:$0xff] }
 0x694   : > { %v2248_v16 = vmax.f32 %v2188_v59, 0.0 }
 0x696   : > { %v3247_v29 = vpop.f32.mrb[100].mxu0 }
 0x697   : > { %v2200_v22 = vpop.f32.mrb[101].mxu0  ;;  %2311 = vadd.xlane.f32.xlu0 %v2247_v43  ;;  %v2209_v51 = vadd.f32 %v3247_v29, %v4837_v7  ;;  %v2365_v7 = vld [vmem:[#allocation2 + $0x30] sm:$0xff] }
 0x698   : > { %v3248_v14 = vpop.f32.mrb[102].mxu0  ;;  %v2201_v28 = vadd.f32 %v2200_v22, %v4838_v17 }
 0x699   : > { %v2203_v27 = vpop.f32.mrb[103].mxu0  ;;  %v2253_v38 = vmax.f32 %v2209_v51, 0.0  ;;  %v2212_v35 = vadd.f32 %v3248_v14, %v4839_v53 }
 0x69a   : > { %v2251_v39 = vmax.f32 %v2201_v28, 0.0  ;;  %v2204_v2 = vadd.f32 %v2203_v27, %v4840_v54 }
 0x69b   : > { %2317 = vadd.xlane.f32.xlu0 %v2250_v49  ;;  %v2254_v12 = vmax.f32 %v2212_v35, 0.0 }
 0x69c   : > { %v2252_v6 = vmax.f32 %v2204_v2, 0.0 }
 0x69e   : > { %v3251_v8 = vpop.f32.mrb[104].mxu0 }
 0x69f   : > { %v2216_v61 = vpop.f32.mrb[105].mxu0  ;;  %2313 = vadd.xlane.f32.xlu0 %v2248_v16  ;;  %v2225_v20 = vadd.f32 %v3251_v8, %v4841_v5 }
 0x6a0   : > { %v3252_v42 = vpop.f32.mrb[106].mxu0  ;;  %v2217_v63 = vadd.f32 %v2216_v61, %v4842_v9 }
 0x6a1   : > { %v2219_v1 = vpop.f32.mrb[107].mxu0  ;;  %v2257_v13 = vmax.f32 %v2225_v20, 0.0  ;;  %v2228_v25 = vadd.f32 %v3252_v42, %v4843_v57 }
 0x6a2   : > { %v2255_v15 = vmax.f32 %v2217_v63, 0.0  ;;  %v2220_v21 = vadd.f32 %v2219_v1, %v4462_v33  ;;  %v2268_v33 = vpop.xlane.xlu1 %2267  ;;  %v2363_v1 = vld [vmem:[#allocation2 + $0x20] sm:$0xff] }
 0x6a3   : > { %2323 = vadd.xlane.f32.xlu0 %v2253_v38  ;;  %v2258_v24 = vmax.f32 %v2228_v25, 0.0  ;;  %v2369_v25 = vld [vmem:[#allocation2 + $0x50] sm:$0xff] }
 0x6a4   : > { %v2256_v19 = vmax.f32 %v2220_v21, 0.0 }
 0x6a6   : > { %v3255_v32 = vpop.f32.mrb[108].mxu0  ;;  %v2270_v37 = vpop.xlane.xlu1 %2269 }
 0x6a7   : > { %v2232_v45 = vpop.f32.mrb[109].mxu0  ;;  %2319 = vadd.xlane.f32.xlu0 %v2251_v39  ;;  %v2241_v0 = vadd.f32 %v3255_v32, %v4473_v44  ;;  %v2264_v44 = vpop.xlane.xlu0 %2263 }
 0x6a8   : > { %v3256_v55 = vpop.f32.mrb[110].mxu0  ;;  %v2233_v58 = vadd.f32 %v2232_v45, %v4468_v10 }
 0x6a9   : > { %v2235_v56 = vpop.f32.mrb[111].mxu0  ;;  %v2261_v40 = vmax.f32 %v2241_v0, 0.0  ;;  %v2244_v47 = vadd.f32 %v3256_v55, %v4487_v23 }
 0x6aa   : > { %v2259_v48 = vmax.f32 %v2233_v58, 0.0  ;;  %v2236_v52 = vadd.f32 %v2235_v56, %v4481_v11  ;;  %v2266_v30 = vpop.xlane.xlu1 %2265 }
 0x6ab   : > { %2325 = vadd.xlane.f32.xlu0 %v2254_v12  ;;  %v2262_v31 = vmax.f32 %v2244_v47, 0.0  ;;  %v2366_v12 = vld [vmem:[#allocation2 + $0x38] sm:$0xff] }
 0x6ac   : > { %v2260_v62 = vmax.f32 %v2236_v52, 0.0  ;;  %v2367_v52 = vld [vmem:[#allocation2 + $0x40] sm:$0xff] }
 0x6ae   : > { %v2276_v18 = vpop.xlane.xlu1 %2275 }
 0x6af   : > { %2321 = vadd.xlane.f32.xlu0 %v2252_v6 }
 0x6b2   : > { %v2272_v34 = vpop.xlane.xlu1 %2271 }
 0x6b3   : > { %2331 = vadd.xlane.f32.xlu0 %v2257_v13  ;;  %v2364_v13 = vld [vmem:[#allocation2 + $0x28] sm:$0xff] }
 0x6b6   : > { %v2278_v23 = vpop.xlane.xlu1 %2277 }
 0x6b7   : > { %2327 = vadd.xlane.f32.xlu0 %v2255_v15 }
 0x6ba   : > { %v2274_v14 = vpop.xlane.xlu1 %2273 }
 0x6bb   : > { %2333 = vadd.xlane.f32.xlu0 %v2258_v24 }
 0x6be   : > { %v2284_v42 = vpop.xlane.xlu1 %2283 }
 0x6bf   : > { %2329 = vadd.xlane.f32.xlu0 %v2256_v19 }
 0x6c2   : > { %v2280_v45 = vpop.xlane.xlu1 %2279 }
 0x6c3   : > { %2339 = vadd.xlane.f32.xlu0 %v2261_v40 }
 0x6c6   : > { %v2286_v63 = vpop.xlane.xlu1 %2285 }
 0x6c7   : > { %2335 = vadd.xlane.f32.xlu0 %v2259_v48 }
 0x6ca   : > { %v2282_v58 = vpop.xlane.xlu1 %2281 }
 0x6cb   : > { %2337 = vadd.xlane.f32.xlu0 %v2260_v62 }
 0x6cf   : > { %2341 = vadd.xlane.f32.xlu0 %v2262_v31 }
 0x720   : > { %v2316_v36 = vpop.xlane.xlu0 %2315 }
 0x721   : > { %v2345_v10 = vadd.f32 %v2316_v36, %v2268_v33 }
 0x723   : > { %v2377_v41 = vadd.f32 %v2361_v3, %v2345_v10 }
 0x724   : > { %v2312_v46 = vpop.xlane.xlu0 %2311 }
 0x725   : > { %2394 = vst.msk [vmem:[#allocation2 + $0x10] sm:$0xff] %vm368_vm0, %v2377_v41  ;;  %v2343_v11 = vadd.f32 %v2312_v46, %v2264_v44  ;;  %v2368_v41 = vld [vmem:[#allocation2 + $0x48] sm:$0xff] }
 0x727   : > { %v2375_v43 = vadd.f32 %v2359_v50, %v2343_v11 }
 0x728   : > { %v2318_v60 = vpop.xlane.xlu0 %2317 }
 0x729   : > { %2392 = vst.msk [vmem:[#allocation2] sm:$0xff] %vm368_vm0, %v2375_v43  ;;  %v2346_v29 = vadd.f32 %v2318_v60, %v2270_v37  ;;  %v2370_v37 = vld [vmem:[#allocation2 + $0x58] sm:$0xff]  ;;  %v2373_v60 = vld [vmem:[#allocation2 + $0x70] sm:$0xff] }
 0x72b   : > { %v2378_v22 = vadd.f32 %v2362_v26, %v2346_v29 }
 0x72c   : > { %v2314_v49 = vpop.xlane.xlu0 %2313  ;;  %v2413_v38 = vld [vmem:[#allocation2 + $0x10] sm:$0xff] }
 0x72d   : > { %2395 = vst.msk [vmem:[#allocation2 + $0x18] sm:$0xff] %vm368_vm0, %v2378_v22  ;;  %v2344_v59 = vadd.f32 %v2314_v49, %v2266_v30  ;;  %v2429_v53 = vmul.f32 0.00390625, %v2413_v38 }
 0x72f   : > { %v2376_v27 = vadd.f32 %v2360_v4, %v2344_v59  ;;  %v2371_v59 = vld [vmem:[#allocation2 + $0x60] sm:$0xff] }
 0x730   : > { %v2324_v16 = vpop.xlane.xlu0 %2323  ;;  %v2411_v51 = vld [vmem:[#allocation2] sm:$0xff] }
 0x731   : > { %2393 = vst.msk [vmem:[#allocation2 + $0x8] sm:$0xff] %vm368_vm0, %v2376_v27  ;;  %v2349_v8 = vadd.f32 %v2324_v16, %v2276_v18  ;;  %v2427_v61 = vmul.f32 0.00390625, %v2411_v51 }
 0x733   : > { %v2381_v17 = vadd.f32 %v2365_v7, %v2349_v8  ;;  %2461 = vperm.xlu1 %3360, %v2427_v61   ;;  %v2372_v61 = vld [vmem:[#allocation2 + $0x68] sm:$0xff] }
 0x734   : > { %v2320_v28 = vpop.xlane.xlu0 %2319  ;;  %v2414_v35 = vld [vmem:[#allocation2 + $0x18] sm:$0xff] }
 0x735   : > { %2398 = vst.msk [vmem:[#allocation2 + $0x30] sm:$0xff] %vm368_vm0, %v2381_v17  ;;  %v2347_v39 = vadd.f32 %v2320_v28, %v2272_v34  ;;  %v2430_v6 = vmul.f32 0.00390625, %v2414_v35  ;;  %v2292_v34 = vpop.xlane.xlu1 %2291  ;;  %v2374_v35 = vld [vmem:[#allocation2 + $0x78] sm:$0xff] }
 0x737   : > { %v2379_v32 = vadd.f32 %v2363_v1, %v2347_v39  ;;  %2471 = vperm.xlu1 %3360, %v2429_v53  }
 0x738   : > { %v2326_v55 = vpop.xlane.xlu0 %2325  ;;  %v2412_v54 = vld [vmem:[#allocation2 + $0x8] sm:$0xff] }
 0x739   : > { %2396 = vst.msk [vmem:[#allocation2 + $0x20] sm:$0xff] %vm368_vm0, %v2379_v32  ;;  %v2350_v2 = vadd.f32 %v2326_v55, %v2278_v23  ;;  %v2428_v56 = vmul.f32 0.00390625, %v2412_v54  ;;  %v2288_v23 = vpop.xlane.xlu1 %2287 }
 0x73b   : > { %v2382_v5 = vadd.f32 %v2366_v12, %v2350_v2  ;;  %2466 = vperm.xlu0 %3359, %v2428_v56   ;;  %2476 = vperm.xlu1 %3360, %v2430_v6  }
 0x73c   : > { %v2322_v20 = vpop.xlane.xlu0 %2321  ;;  %v2417_v0 = vld [vmem:[#allocation2 + $0x30] sm:$0xff] }
 0x73d   : > { %2399 = vst.msk [vmem:[#allocation2 + $0x38] sm:$0xff] %vm368_vm0, %v2382_v5  ;;  %v2348_v9 = vadd.f32 %v2322_v20, %v2274_v14  ;;  %v2433_v62 = vmul.f32 0.00390625, %v2417_v0  ;;  %v2290_v7 = vpop.xlane.xlu1 %2289 }
 0x73f   : > { %v2380_v15 = vadd.f32 %v2364_v13, %v2348_v9 }
 0x740   : > { %v2332_v57 = vpop.xlane.xlu0 %2331  ;;  %v2415_v24 = vld [vmem:[#allocation2 + $0x20] sm:$0xff] }
 0x741   : > { %2397 = vst.msk [vmem:[#allocation2 + $0x28] sm:$0xff] %vm368_vm0, %v2380_v15  ;;  %v2353_v21 = vadd.f32 %v2332_v57, %v2284_v42  ;;  %v2431_v19 = vmul.f32 0.00390625, %v2415_v24  ;;  %v2294_v39 = vpop.xlane.xlu1 %2293  ;;  %v2443_v57 = vld [vmem:[#allocation9] sm:$0xff] }
 0x743   : > { %v2385_v40 = vadd.f32 %v2369_v25, %v2353_v21  ;;  %2481 = vperm.xlu0 %3359, %v2431_v19   ;;  %v2445_v19 = vld [vmem:[#allocation9 + $0x10] sm:$0xff] }
 0x744   : > { %v2328_v48 = vpop.xlane.xlu0 %2327  ;;  %v2418_v36 = vld [vmem:[#allocation2 + $0x38] sm:$0xff] }
 0x745   : > { %2402 = vst.msk [vmem:[#allocation2 + $0x50] sm:$0xff] %vm368_vm0, %v2385_v40  ;;  %v2351_v47 = vadd.f32 %v2328_v48, %v2280_v45  ;;  %v2434_v50 = vmul.f32 0.00390625, %v2418_v36  ;;  %v2446_v48 = vld [vmem:[#allocation9 + $0x18] sm:$0xff]  ;;  %v2449_v36 = vld [vmem:[#allocation9 + $0x30] sm:$0xff] }
 0x747   : > { %v2383_v31 = vadd.f32 %v2367_v52, %v2351_v47  ;;  %2491 = vperm.xlu0 %3359, %v2433_v62   ;;  %v2447_v52 = vld [vmem:[#allocation9 + $0x20] sm:$0xff] }
 0x748   : > { %v2334_v33 = vpop.xlane.xlu0 %2333  ;;  %v2416_v30 = vld [vmem:[#allocation2 + $0x28] sm:$0xff] }
 0x749   : > { %2400 = vst.msk [vmem:[#allocation2 + $0x40] sm:$0xff] %vm368_vm0, %v2383_v31  ;;  %v2354_v18 = vadd.f32 %v2334_v33, %v2286_v63  ;;  %v2432_v44 = vmul.f32 0.00390625, %v2416_v30  ;;  %v2444_v63 = vld [vmem:[#allocation9 + $0x8] sm:$0xff] }
 0x74a   : > { %v2448_v31 = vld [vmem:[#allocation9 + $0x28] sm:$0xff] }
 0x74b   : > { %v2386_v3 = vadd.f32 %v2370_v37, %v2354_v18  ;;  %2486 = vperm.xlu1 %3360, %v2432_v44  }
 0x74c   : > { %v2330_v10 = vpop.xlane.xlu0 %2329  ;;  %v2421_v14 = vld [vmem:[#allocation2 + $0x50] sm:$0xff] }
 0x74d   : > { %2403 = vst.msk [vmem:[#allocation2 + $0x58] sm:$0xff] %vm368_vm0, %v2386_v3  ;;  %v2352_v46 = vadd.f32 %v2330_v10, %v2282_v58  ;;  %v2437_v16 = vmul.f32 0.00390625, %v2421_v14 }
 0x74f   : > { %v2384_v11 = vadd.f32 %v2368_v41, %v2352_v46  ;;  %2496 = vperm.xlu1 %3360, %v2434_v50   ;;  %v2450_v41 = vld [vmem:[#allocation9 + $0x38] sm:$0xff] }
 0x750   : > { %v2340_v43 = vpop.xlane.xlu0 %2339  ;;  %v2419_v26 = vld [vmem:[#allocation2 + $0x40] sm:$0xff] }
 0x751   : > { %2401 = vst.msk [vmem:[#allocation2 + $0x48] sm:$0xff] %vm368_vm0, %v2384_v11  ;;  %v2357_v29 = vadd.f32 %v2340_v43, %v2292_v34  ;;  %v2435_v22 = vmul.f32 0.00390625, %v2419_v26  ;;  %v2451_v11 = vld [vmem:[#allocation9 + $0x40] sm:$0xff] }
 0x753   : > { %v2389_v49 = vadd.f32 %v2373_v60, %v2357_v29  ;;  %2501 = vperm.xlu0 %3359, %v2435_v22   ;;  %v2452_v29 = vld [vmem:[#allocation9 + $0x48] sm:$0xff] }
 0x754   : > { %v2336_v4 = vpop.xlane.xlu0 %2335  ;;  %v2422_v28 = vld [vmem:[#allocation2 + $0x58] sm:$0xff] }
 0x755   : > { %2406 = vst.msk [vmem:[#allocation2 + $0x70] sm:$0xff] %vm368_vm0, %v2389_v49  ;;  %v2355_v27 = vadd.f32 %v2336_v4, %v2288_v23  ;;  %v2438_v45 = vmul.f32 0.00390625, %v2422_v28 }
 0x757   : > { %v2387_v51 = vadd.f32 %v2371_v59, %v2355_v27  ;;  %2511 = vperm.xlu0 %3359, %v2437_v16   ;;  %v2453_v59 = vld [vmem:[#allocation9 + $0x50] sm:$0xff] }
 0x758   : > { %v2338_v8 = vpop.xlane.xlu0 %2337  ;;  %v2420_v42 = vld [vmem:[#allocation2 + $0x48] sm:$0xff] }
 0x759   : > { %2404 = vst.msk [vmem:[#allocation2 + $0x60] sm:$0xff] %vm368_vm0, %v2387_v51  ;;  %v2356_v38 = vadd.f32 %v2338_v8, %v2290_v7  ;;  %v2436_v17 = vmul.f32 0.00390625, %v2420_v42  ;;  %v2454_v7 = vld [vmem:[#allocation9 + $0x58] sm:$0xff] }
 0x75b   : > { %v2388_v1 = vadd.f32 %v2372_v61, %v2356_v38  ;;  %2506 = vperm.xlu1 %3360, %v2436_v17   ;;  %v2455_v61 = vld [vmem:[#allocation9 + $0x60] sm:$0xff] }
 0x75c   : > { %v2342_v53 = vpop.xlane.xlu0 %2341  ;;  %v2425_v2 = vld [vmem:[#allocation2 + $0x70] sm:$0xff] }
 0x75d   : > { %2405 = vst.msk [vmem:[#allocation2 + $0x68] sm:$0xff] %vm368_vm0, %v2388_v1  ;;  %v2358_v32 = vadd.f32 %v2342_v53, %v2294_v39  ;;  %v2441_v6 = vmul.f32 0.00390625, %v2425_v2  ;;  %v2456_v1 = vld [vmem:[#allocation9 + $0x68] sm:$0xff]  ;;  %v2457_v53 = vld [vmem:[#allocation9 + $0x70] sm:$0xff] }
 0x75f   : > { %v2390_v55 = vadd.f32 %v2374_v35, %v2358_v32  ;;  %2516 = vperm.xlu1 %3360, %v2438_v45  }
 0x760   : > { %v2423_v12 = vld [vmem:[#allocation2 + $0x60] sm:$0xff] }
 0x761   : > { %2407 = vst.msk [vmem:[#allocation2 + $0x78] sm:$0xff] %vm368_vm0, %v2390_v55  ;;  %v2439_v54 = vmul.f32 0.00390625, %v2423_v12  ;;  %v2458_v12 = vld [vmem:[#allocation9 + $0x78] sm:$0xff] }
 0x763   : > { %2521 = vperm.xlu0 %3359, %v2439_v54  }
 0x764   : > { %v2424_v56 = vld [vmem:[#allocation2 + $0x68] sm:$0xff] }
 0x765   : > { %v2440_v5 = vmul.f32 0.00390625, %v2424_v56 }
 0x767   : > { %2531 = vperm.xlu0 %3359, %v2441_v6   ;;  %2526 = vperm.xlu1 %3360, %v2440_v5  }
 0x768   : > { %v2426_v20 = vld [vmem:[#allocation2 + $0x78] sm:$0xff] }
 0x769   : > { %v2442_v13 = vmul.f32 0.00390625, %v2426_v20 }
 0x76b   : > { %2536 = vperm.xlu1 %3360, %v2442_v13  }
 0x7b2   : > { %v2462_v9 = vpop.permute.xlu1 %2461 }
 0x7b3   : > { %v2539_v21 = vmul.f32 %v2462_v9, %v2443_v57 }
 0x7b6   : > { %v2472_v25 = vpop.permute.xlu1 %2471 }
 0x7b7   : > { %v2541_v58 = vmul.f32 %v2472_v25, %v2445_v19  ;;  %v2576_v25 = vld [vmem:[%s4685_s6] sm:$0x1] }
 0x7ba   : > { %v2467_v15 = vpop.permute.xlu0 %2466  ;;  %v2477_v40 = vpop.permute.xlu1 %2476 }
 0x7bb   : > { %v2540_v24 = vmul.f32 %v2467_v15, %v2444_v63  ;;  %v2542_v37 = vmul.f32 %v2477_v40, %v2446_v48 }
 0x7bd   : > { %v2555_v0 = vadd.f32 %v2540_v24, %v2539_v21 }
 0x7bf   : > { %v2556_v62 = vadd.f32 %v2555_v0, %v2541_v58 }
 0x7c1   : > { %v2557_v18 = vadd.f32 %v2556_v62, %v2542_v37 }
 0x7c2   : > { %v2482_v47 = vpop.permute.xlu0 %2481 }
 0x7c3   : > { %v2543_v30 = vmul.f32 %v2482_v47, %v2447_v52 }
 0x7c5   : > { %v2558_v34 = vadd.f32 %v2557_v18, %v2543_v30 }
 0x7c6   : > { %v2492_v3 = vpop.permute.xlu0 %2491 }
 0x7c7   : > { %v2545_v50 = vmul.f32 %v2492_v3, %v2449_v36 }
 0x7ca   : > { %v2487_v33 = vpop.permute.xlu1 %2486 }
 0x7cb   : > { %v2544_v44 = vmul.f32 %v2487_v33, %v2448_v31 }
 0x7cd   : > { %v2559_v10 = vadd.f32 %v2558_v34, %v2544_v44 }
 0x7ce   : > { %v2497_v46 = vpop.permute.xlu1 %2496 }
 0x7cf   : > { %v2560_v43 = vadd.f32 %v2559_v10, %v2545_v50  ;;  %v2546_v60 = vmul.f32 %v2497_v46, %v2450_v41 }
 0x7d1   : > { %v2561_v22 = vadd.f32 %v2560_v43, %v2546_v60 }
 0x7d2   : > { %v2502_v23 = vpop.permute.xlu0 %2501 }
 0x7d3   : > { %v2547_v26 = vmul.f32 %v2502_v23, %v2451_v11 }
 0x7d5   : > { %v2562_v49 = vadd.f32 %v2561_v22, %v2547_v26 }
 0x7d6   : > { %v2512_v27 = vpop.permute.xlu0 %2511 }
 0x7d7   : > { %v2549_v8 = vmul.f32 %v2512_v27, %v2453_v59 }
 0x7da   : > { %v2507_v14 = vpop.permute.xlu1 %2506 }
 0x7db   : > { %v2548_v4 = vmul.f32 %v2507_v14, %v2452_v29 }
 0x7dd   : > { %v2563_v16 = vadd.f32 %v2562_v49, %v2548_v4 }
 0x7de   : > { %v2517_v51 = vpop.permute.xlu1 %2516 }
 0x7df   : > { %v2564_v42 = vadd.f32 %v2563_v16, %v2549_v8  ;;  %v2550_v38 = vmul.f32 %v2517_v51, %v2454_v7 }
 0x7e1   : > { %v2565_v39 = vadd.f32 %v2564_v42, %v2550_v38 }
 0x7e2   : > { %v2522_v17 = vpop.permute.xlu0 %2521 }
 0x7e3   : > { %v2551_v28 = vmul.f32 %v2522_v17, %v2455_v61 }
 0x7e5   : > { %v2566_v45 = vadd.f32 %v2565_v39, %v2551_v28 }
 0x7e6   : > { %v2532_v35 = vpop.permute.xlu0 %2531  ;;  %v2527_v32 = vpop.permute.xlu1 %2526 }
 0x7e7   : > { %v2552_v55 = vmul.f32 %v2527_v32, %v2456_v1  ;;  %v2553_v54 = vmul.f32 %v2532_v35, %v2457_v53 }
 0x7e9   : > { %v2567_v2 = vadd.f32 %v2566_v45, %v2552_v55 }
 0x7ea   : > { %v2537_v56 = vpop.permute.xlu1 %2536 }
 0x7eb   : > { %v2568_v6 = vadd.f32 %v2567_v2, %v2553_v54  ;;  %v2554_v5 = vmul.f32 %v2537_v56, %v2458_v12 }
 0x7ed   : > { %v2569_v20 = vadd.f32 %v2568_v6, %v2554_v5 }
 0x7ef   : > { %v2570_v13 = vrot.slane %v2569_v20, 4 }
 0x7f1   : > { %v2571_v9 = vadd.f32 %v2570_v13, %v2569_v20 }
 0x7f3   : > { %v2572_v63 = vrot.slane %v2571_v9, 2 }
 0x7f5   : > { %v2573_v15 = vadd.f32 %v2572_v63, %v2571_v9 }
 0x7f7   : > { %v2574_v57 = vrot.slane %v2573_v15, 1 }
 0x7f9   : > { %v2575_v24 = vadd.f32 %v2574_v57, %v2573_v15 }
 0x7fb   : > { %v2577_v21 = vadd.f32 %v2576_v25, %v2575_v24 }
 0x7fd   : > { %2578 = vst [vmem:[%s352_s23] sm:$0x1] %v2577_v21 }
 0x7fe   : > { %3619 = shalt.err (!%p3616_p6)
}
 0x7ff   : > { %s3620_s17 = scalar_lea.hbm %s4632_s2, 16  ;;  %s3624_s21 = scalar_lea.hbm %s4686_s7, 32 }
 0x800   : > { %p3621_p7 = scmp.ne.s32.totalorder %s4632_s2, %s3620_s17  ;;  %p3625_p4 = scmp.lt.u32.totalorder %s4632_s2, %s4686_s7 }
 0x801   : > { %p3626_p1 = scmp.lt.u32.totalorder %s3624_s21, %s3620_s17  ;;  %p3628_p8 = scmp.lt.u32.totalorder %s3620_s17, %s4632_s2 }
 0x802   : > { %p3622_p9 = pnand %p3621_p7, %p4844_p10 }
 0x803   : > { %p3627_p13 = por %p3626_p1, %p3625_p4 }
 0x804   : > { %p3623_p12 = pneg %p3622_p9 }
 0x805   : > { %p3629_p11 = por %p3628_p8, %p3627_p13 }
 0x807   : > { %p3630_p0 = pnand %p3629_p11, %p3623_p12 }
 0x809   : > { %3633 = shalt.err (!%p3630_p0)
}
 0x80a   : > { %3273 = dma.vmem_to_hbm [thread:$0]  (%p4844_p10), %s4634_s15, 16, %s4632_s2, %s2580_s16  }
 0x80b PF: > { %p3300_p2 = scmp.ge.s32.totalorder %s3696_s29, 2  ;;  %s2604_s26 = sand.u32 1, %s3676_s24  }
 0x80c   : > { %p4845_p3 = scmp.ne.s32.totalorder %s4745_s13, 0  ;;  %s2605_s28 = scalar_lea.sflag [#allocation5], %s2604_s26 }
 0x80e   : > { %p3289_p5 = pnand %p3300_p2, %p4845_p3 }
 0x810   : > { %3671 = dma.done.wait (!%p3289_p5), %s2605_s28, 16  }
 0x811   : > { %3673 = vsyncadd (!%p3289_p5), %s2605_s28, 4294967280  ;;  %s23_s29 = sadd.s32 1, %s3696_s29   ;;  %s4846_s22 = sld [smem:[#allocation16_spill]] }
 0x812   : > { %p20_p6 = scmp.ge.s32.totalorder %s23_s29, 4   ;;  %s4847_s26 = sld [smem:[#allocation19_spill]] }
 0x813   : > { %s4848_s27 = sld [smem:[#allocation17_spill]]  ;;  %s4849_s28 = sld [smem:[#allocation18_spill]] }
 0x814   : > { %s4850_s24 = smov %s3680_s25  ;;  %22 = sbr.rel (!%p20_p6) target bundleno = 9 (0x9), region = 108 }
 0x817   : > { %s4851_s25 = smov %s4846_s22 }
 0x81b   :  { %2609 = vsyncpa [#allocation4], 1 }
 0x81c   :  { %2611 = vsyncpa [#allocation4 + $0x1], 1 }
 0x81d   :  { %2612 = vsyncpa [#allocation7], 1 }
 0x81e   :  { %2613 = vsyncpa [#allocation10], 1 }
 0x81f   :  { %2614 = vsyncpa [#allocation5], 1 }
 0x820   :  { %2616 = vsyncpa [#allocation5 + $0x1], 1 }

</bundles_post_ra>
